<compile_context>
chip_gen: v7x
topology: tpu7x:2x2x1
jax: 0.10.0
libtpu: 0.0.40
codegen_flags: <defaults>
</compile_context>

<pallas_src>
import jax
import jax.numpy as jnp
import numpy as np
from jax import lax
from jax.experimental import pallas as pl
from jax.experimental.pallas import tpu as pltpu


# ---------------------------------------------------------------------------
# Pallas kernel: in-kernel one-hot embedding/projection gather + fused
# bidirectional GRU recurrence, whole sequence resident in VMEM.
# ---------------------------------------------------------------------------
def _bigru_kernel(tok_ref, h0_ref, projf_ref, projb_ref, wall_ref, bn_ref,
                  out_ref, hid_ref, gx_scr):
    T, B, H2 = out_ref.shape          # static
    H = H2 // 2
    Vp = projf_ref.shape[0]
    GS = wall_ref.shape[1] // 3       # 128-lane gate slot stride
    TB = T * B

    # ---- input projections for all timesteps via one-hot MXU matmuls (NOT on
    # the serial path).  tok column 0 = forward-time token ids, column 1 = the
    # time-reversed token ids, so the result already carries the fused
    # [fwd | bwd] direction layout in forward step order.
    tok = tok_ref[...]                                              # (T*B, 2) int32
    iota_v = lax.broadcasted_iota(jnp.int32, (TB, Vp), 1)
    oh_f = (tok[:, 0:1] == iota_v).astype(jnp.float32)              # (T*B, Vp)
    oh_b = (tok[:, 1:2] == iota_v).astype(jnp.float32)
    gx_scr[...] = (
        jnp.dot(oh_f, projf_ref[...], preferred_element_type=jnp.float32)
        + jnp.dot(oh_b, projb_ref[...], preferred_element_type=jnp.float32)
    )                                                               # (T*B, 3*GS)

    # ---- recurrence (fully unrolled, static indices, one fused matmul / step)
    wall = wall_ref[...]                                 # (2H, 3*GS), hoisted
    bn = jnp.broadcast_to(bn_ref[...], (B, H2))          # hoisted broadcast of b_hn
    s = jnp.concatenate([h0_ref[0], h0_ref[1]], axis=-1)  # (B, 2H) = [h_fwd | h_bwd]

    states = []
    for t in range(T):
        gx = gx_scr[t * B:(t + 1) * B, :]                # (B, 3*GS), static load
        gh = jnp.dot(s, wall, preferred_element_type=jnp.float32)   # (B, 3*GS)
        # gate slices start at vreg-aligned lane offsets 0 / 128 / 256
        r = jax.nn.sigmoid(gx[:, 0:H2] + gh[:, 0:H2])
        z = jax.nn.sigmoid(gx[:, GS:GS + H2] + gh[:, GS:GS + H2])
        n = jnp.tanh(gx[:, 2 * GS:2 * GS + H2] + r * (gh[:, 2 * GS:2 * GS + H2] + bn))
        s = n + z * (s - n)                              # == (1-z)*n + z*s
        states.append(s)

    # ---- one deferred lane-dense output store (no per-step partial stores):
    #   out[t, :, 0:H] = fwd state after step t
    #   out[t, :, H: ] = bwd state after consuming x_t  (== fused state T-1-t)
    lane = lax.broadcasted_iota(jnp.int32, (T, B, H2), 2)
    fwd = jnp.concatenate([states[t][None] for t in range(T)], axis=0)
    bwd = jnp.concatenate([states[T - 1 - t][None] for t in range(T)], axis=0)
    out_ref[...] = jnp.where(lane < H, fwd, bwd)

    # final hidden, torch layout (2, B, H): dir 0 = fwd, dir 1 = bwd
    hid_ref[0] = s[:, 0:H]
    hid_ref[1] = s[:, H:]


def bigru_pallas(tok2, h0, projf, projb, wall, bn):
    TB = tok2.shape[0]
    _, B, H = h0.shape
    T = TB // B
    GS3 = wall.shape[1]
    vmem = lambda: pl.BlockSpec(memory_space=pltpu.MemorySpace.VMEM)
    return pl.pallas_call(
        _bigru_kernel,
        out_shape=(
            jax.ShapeDtypeStruct((T, B, 2 * H), jnp.float32),   # GRU output
            jax.ShapeDtypeStruct((2, B, H), jnp.float32),       # final hidden
        ),
        in_specs=[vmem() for _ in range(6)],
        out_specs=(vmem(), vmem()),
        scratch_shapes=[pltpu.VMEM((TB, GS3), jnp.float32)],
    )(tok2, h0, projf, projb, wall, bn)


# ---------------------------------------------------------------------------
# Parameter preparation (run ONCE, not per forward call).
# Params follow nn.GRU but pre-transposed: W_ih (E, 3H), W_hh (H, 3H),
# biases (1, 3H), PyTorch gate order [r, z, n].
# ---------------------------------------------------------------------------
def prepare_encoder_params(emb_table, params):
    wih_f, whh_f, bih_f, bhh_f, wih_b, whh_b, bih_b, bhh_b = params
    H = whh_f.shape[0]
    V = emb_table.shape[0]
    GS = 128                                     # one 128-lane slot per gate
    assert 2 * H <= GS, "gate-slot layout assumes 2*hidden_size <= 128 lanes"
    Vp = ((V + 7) // 8) * 8                      # pad vocab rows to sublane multiple

    # b_ih + b_hh folded for r/z; n keeps b_hn separate (it is scaled by r).
    bias_f = jnp.concatenate([bih_f[:, :2 * H] + bhh_f[:, :2 * H], bih_f[:, 2 * H:]], -1)
    bias_b = jnp.concatenate([bih_b[:, :2 * H] + bhh_b[:, :2 * H], bih_b[:, 2 * H:]], -1)
    pf = emb_table @ wih_f + bias_f              # (V, 3H): embed + x@W_ih + bias, fwd
    pb = emb_table @ wih_b + bias_b              # (V, 3H): backward direction

    # Padded per-token gate tables: gate g lives in lanes [g*128, g*128+2H);
    # forward direction occupies the low H lanes of the slot, backward the next H.
    projf = jnp.zeros((Vp, 3 * GS), jnp.float32)
    projb = jnp.zeros((Vp, 3 * GS), jnp.float32)
    for g in range(3):
        projf = projf.at[:V, g * GS:g * GS + H].set(pf[:, g * H:(g + 1) * H])
        projb = projb.at[:V, g * GS + H:g * GS + 2 * H].set(pb[:, g * H:(g + 1) * H])

    # Fused block-diagonal recurrent weight: gh = s @ W_all, s = [h_f | h_b].
    wall = jnp.zeros((2 * H, 3 * GS), jnp.float32)
    for g in range(3):
        wall = wall.at[0:H, g * GS:g * GS + H].set(whh_f[:, g * H:(g + 1) * H])
        wall = wall.at[H:2 * H, g * GS + H:g * GS + 2 * H].set(whh_b[:, g * H:(g + 1) * H])

    bn = jnp.concatenate([bhh_f[:, 2 * H:3 * H], bhh_b[:, 2 * H:3 * H]], axis=-1)  # (1, 2H)
    return projf, projb, wall, bn


# ---------------------------------------------------------------------------
# Per-call forward: embedding -> dropout (identity) -> BiGRU.
# The only per-call JAX work is stacking fwd/reversed token ids.
# ---------------------------------------------------------------------------
def encoder_bigru_forward(tokens, h0, prepared):
    projf, projb, wall, bn = prepared
    T, B = tokens.shape
    # column 0 = forward-time tokens, column 1 = time-reversed tokens
    tok2 = jnp.stack([tokens, tokens[::-1]], axis=-1).reshape(T * B, 2)
    return bigru_pallas(tok2, h0, projf, projb, wall, bn)


# ---------------------------------------------------------------------------
# Pure-JAX reference (mirrors torch.nn.GRU math) for the correctness check.
# ---------------------------------------------------------------------------
def _gru_ref_dir(x_seq, h0, wih, whh, bih, bhh, H):
    def step(h, x_t):
        gx = x_t @ wih + bih[0]
        gh = h @ whh + bhh[0]
        r = jax.nn.sigmoid(gx[:, :H] + gh[:, :H])
        z = jax.nn.sigmoid(gx[:, H:2 * H] + gh[:, H:2 * H])
        n = jnp.tanh(gx[:, 2 * H:] + r * gh[:, 2 * H:])
        h_new = (1.0 - z) * n + z * h
        return h_new, h_new
    hT, outs = lax.scan(step, h0, x_seq)
    return outs, hT


def encoder_bigru_ref(tokens, h0, emb_table, params, H):
    wih_f, whh_f, bih_f, bhh_f, wih_b, whh_b, bih_b, bhh_b = params
    x_emb = jnp.take(emb_table, tokens, axis=0).astype(jnp.float32)
    out_f, hT_f = _gru_ref_dir(x_emb, h0[0], wih_f, whh_f, bih_f, bhh_f, H)
    out_b_rev, hT_b = _gru_ref_dir(x_emb[::-1], h0[1], wih_b, whh_b, bih_b, bhh_b, H)
    out_b = out_b_rev[::-1]
    return jnp.concatenate([out_f, out_b], axis=-1), jnp.stack([hT_f, hT_b], axis=0)


if __name__ == "__main__":
    # Module hyperparameters (small, consistent with the PyTorch module).
    INPUT_SIZE = 50        # vocab size
    EMB = 16               # embedding_size
    HID = 32               # hidden_size
    T, B = 8, 4            # seq_len, batch (seq-first, like nn.GRU default)
    # NOTE: B >= 8 would double useful MXU/vreg occupancy for free; kept at 4 to
    # match the spec's small example.

    key = jax.random.PRNGKey(0)
    keys = jax.random.split(key, 12)
    k = 1.0 / np.sqrt(HID)

    def u(kk, shape):
        return jax.random.uniform(kk, shape, jnp.float32, minval=-k, maxval=k)

    emb_table = jax.random.normal(keys[0], (INPUT_SIZE, EMB), jnp.float32)
    params = (
        u(keys[1], (EMB, 3 * HID)),   # W_ih forward  (transposed)
        u(keys[2], (HID, 3 * HID)),   # W_hh forward  (transposed)
        u(keys[3], (1, 3 * HID)),     # b_ih forward
        u(keys[4], (1, 3 * HID)),     # b_hh forward
        u(keys[5], (EMB, 3 * HID)),   # W_ih backward (transposed)
        u(keys[6], (HID, 3 * HID)),   # W_hh backward (transposed)
        u(keys[7], (1, 3 * HID)),     # b_ih backward
        u(keys[8], (1, 3 * HID)),     # b_hh backward
    )

    tokens = jax.random.randint(keys[9], (T, B), 0, INPUT_SIZE, dtype=jnp.int32)
    h0 = 0.1 * jax.random.normal(keys[10], (2, B, HID), jnp.float32)

    # One-time parameter preparation (folded tables / fused weights).
    prepared = prepare_encoder_params(emb_table, params)
    prepared = jax.tree_util.tree_map(jax.block_until_ready, prepared)

    fwd = jax.jit(encoder_bigru_forward)
    out, hidden = fwd(tokens, h0, prepared)
    out = jax.block_until_ready(out)
    hidden = jax.block_until_ready(hidden)

    # Correctness check against the pure-JAX reference.
    out_ref, hidden_ref = encoder_bigru_ref(tokens, h0, emb_table, params, HID)
    np.testing.assert_allclose(np.asarray(out), np.asarray(out_ref), atol=1e-4, rtol=1e-4)
    np.testing.assert_allclose(np.asarray(hidden), np.asarray(hidden_ref), atol=1e-4, rtol=1e-4)

    assert out.shape == (T, B, 2 * HID)
    assert hidden.shape == (2, B, HID)
    print("KERNEL_OK")
</pallas_src>

<mosaic_0001>
module attributes {stable_mosaic.version = 11 : i64} {
  func.func @_bigru_kernel(%arg0: memref<32x2xi32, #tpu.memory_space<vmem>>, %arg1: memref<2x4x32xf32, #tpu.memory_space<vmem>>, %arg2: memref<56x384xf32, #tpu.memory_space<vmem>>, %arg3: memref<56x384xf32, #tpu.memory_space<vmem>>, %arg4: memref<64x384xf32, #tpu.memory_space<vmem>>, %arg5: memref<1x64xf32, #tpu.memory_space<vmem>>, %arg6: memref<8x4x64xf32, #tpu.memory_space<vmem>>, %arg7: memref<2x4x32xf32, #tpu.memory_space<vmem>>, %arg8: memref<32x384xf32, #tpu.memory_space<vmem>>) attributes {dimension_semantics = [], scalar_prefetch = 0 : i64, scratch_operands = 1 : i64, tpu.core_type = #tpu.core_type<tc>} {
    %c0 = arith.constant 0 : index
    %c0_0 = arith.constant 0 : index
    %0 = vector.load %arg0[%c0, %c0_0] : memref<32x2xi32, #tpu.memory_space<vmem>>, vector<32x2xi32>
    %1 = tpu.iota {dimensions = array<i32: 1>} : vector<32x56xi32>
    %2 = vector.extract_strided_slice %0 {offsets = [0, 0], sizes = [32, 1], strides = [1, 1]} : vector<32x2xi32> to vector<32x1xi32>
    %3 = vector.broadcast %2 : vector<32x1xi32> to vector<32x56xi32>
    %4 = arith.cmpi eq, %3, %1 : vector<32x56xi32>
    %5 = arith.extui %4 : vector<32x56xi1> to vector<32x56xi32>
    %6 = arith.sitofp %5 : vector<32x56xi32> to vector<32x56xf32>
    %7 = vector.extract_strided_slice %0 {offsets = [0, 1], sizes = [32, 1], strides = [1, 1]} : vector<32x2xi32> to vector<32x1xi32>
    %8 = vector.broadcast %7 : vector<32x1xi32> to vector<32x56xi32>
    %9 = arith.cmpi eq, %8, %1 : vector<32x56xi32>
    %10 = arith.extui %9 : vector<32x56xi1> to vector<32x56xi32>
    %11 = arith.sitofp %10 : vector<32x56xi32> to vector<32x56xf32>
    %c0_1 = arith.constant 0 : index
    %c0_2 = arith.constant 0 : index
    %12 = vector.load %arg2[%c0_1, %c0_2] : memref<56x384xf32, #tpu.memory_space<vmem>>, vector<56x384xf32>
    %cst = arith.constant dense<0.000000e+00> : vector<32x384xf32>
    %13 = tpu.matmul %6, %12, %cst {dimension_numbers = #tpu.dot_dimension_numbers<[1], [0], [0], [1], [0, 0, 1, 1], [], []>} : vector<32x56xf32>, vector<56x384xf32>, vector<32x384xf32> -> vector<32x384xf32>
    %c0_3 = arith.constant 0 : index
    %c0_4 = arith.constant 0 : index
    %14 = vector.load %arg3[%c0_3, %c0_4] : memref<56x384xf32, #tpu.memory_space<vmem>>, vector<56x384xf32>
    %cst_5 = arith.constant dense<0.000000e+00> : vector<32x384xf32>
    %15 = tpu.matmul %11, %14, %cst_5 {dimension_numbers = #tpu.dot_dimension_numbers<[1], [0], [0], [1], [0, 0, 1, 1], [], []>} : vector<32x56xf32>, vector<56x384xf32>, vector<32x384xf32> -> vector<32x384xf32>
    %16 = arith.addf %13, %15 : vector<32x384xf32>
    %c0_6 = arith.constant 0 : index
    %c0_7 = arith.constant 0 : index
    %17 = vector.load %arg8[%c0_6, %c0_7] : memref<32x384xf32, #tpu.memory_space<vmem>>, vector<32x384xf32>
    tpu.vector_store %arg8[%c0_6, %c0_7], %16 {strides = array<i32>} : memref<32x384xf32, #tpu.memory_space<vmem>>, vector<32x384xf32>,
    %c0_8 = arith.constant 0 : index
    %c0_9 = arith.constant 0 : index
    %18 = vector.load %arg4[%c0_8, %c0_9] : memref<64x384xf32, #tpu.memory_space<vmem>>, vector<64x384xf32>
    %c0_10 = arith.constant 0 : index
    %c0_11 = arith.constant 0 : index
    %19 = vector.load %arg5[%c0_10, %c0_11] : memref<1x64xf32, #tpu.memory_space<vmem>>, vector<1x64xf32>
    %20 = vector.shape_cast %19 : vector<1x64xf32> to vector<1x64xf32>
    %21 = vector.broadcast %20 : vector<1x64xf32> to vector<4x64xf32>
    %c0_12 = arith.constant 0 : index
    %c0_13 = arith.constant 0 : index
    %c0_14 = arith.constant 0 : index
    %22 = vector.load %arg1[%c0_12, %c0_13, %c0_14] : memref<2x4x32xf32, #tpu.memory_space<vmem>>, vector<1x4x32xf32>
    %23 = vector.shape_cast %22 : vector<1x4x32xf32> to vector<4x32xf32>
    %c1 = arith.constant 1 : index
    %c0_15 = arith.constant 0 : index
    %c0_16 = arith.constant 0 : index
    %24 = vector.load %arg1[%c1, %c0_15, %c0_16] : memref<2x4x32xf32, #tpu.memory_space<vmem>>, vector<1x4x32xf32>
    %25 = vector.shape_cast %24 : vector<1x4x32xf32> to vector<4x32xf32>
    %26 = tpu.concatenate %23, %25 in 1 : vector<4x32xf32>, vector<4x32xf32> -> vector<4x64xf32>
    %c0_17 = arith.constant 0 : index
    %c0_18 = arith.constant 0 : index
    %27 = vector.load %arg8[%c0_17, %c0_18] : memref<32x384xf32, #tpu.memory_space<vmem>>, vector<4x384xf32>
    %cst_19 = arith.constant dense<0.000000e+00> : vector<4x384xf32>
    %28 = tpu.matmul %26, %18, %cst_19 {dimension_numbers = #tpu.dot_dimension_numbers<[1], [0], [0], [1], [0, 0, 1, 1], [], []>} : vector<4x64xf32>, vector<64x384xf32>, vector<4x384xf32> -> vector<4x384xf32>
    %29 = vector.extract_strided_slice %27 {offsets = [0, 0], sizes = [4, 64], strides = [1, 1]} : vector<4x384xf32> to vector<4x64xf32>
    %30 = vector.extract_strided_slice %28 {offsets = [0, 0], sizes = [4, 64], strides = [1, 1]} : vector<4x384xf32> to vector<4x64xf32>
    %31 = arith.addf %29, %30 : vector<4x64xf32>
    %32 = arith.negf %31 : vector<4x64xf32>
    %33 = math.exp %32 : vector<4x64xf32>
    %cst_20 = arith.constant 1.000000e+00 : f32
    %34 = vector.broadcast %cst_20 : f32 to vector<4x64xf32>
    %35 = arith.addf %34, %33 : vector<4x64xf32>
    %36 = arith.divf %34, %35 : vector<4x64xf32>
    %37 = vector.extract_strided_slice %27 {offsets = [0, 128], sizes = [4, 64], strides = [1, 1]} : vector<4x384xf32> to vector<4x64xf32>
    %38 = vector.extract_strided_slice %28 {offsets = [0, 128], sizes = [4, 64], strides = [1, 1]} : vector<4x384xf32> to vector<4x64xf32>
    %39 = arith.addf %37, %38 : vector<4x64xf32>
    %40 = arith.negf %39 : vector<4x64xf32>
    %41 = math.exp %40 : vector<4x64xf32>
    %cst_21 = arith.constant 1.000000e+00 : f32
    %42 = vector.broadcast %cst_21 : f32 to vector<4x64xf32>
    %43 = arith.addf %42, %41 : vector<4x64xf32>
    %44 = arith.divf %42, %43 : vector<4x64xf32>
    %45 = vector.extract_strided_slice %27 {offsets = [0, 256], sizes = [4, 64], strides = [1, 1]} : vector<4x384xf32> to vector<4x64xf32>
    %46 = vector.extract_strided_slice %28 {offsets = [0, 256], sizes = [4, 64], strides = [1, 1]} : vector<4x384xf32> to vector<4x64xf32>
    %47 = arith.addf %46, %21 : vector<4x64xf32>
    %48 = arith.mulf %36, %47 : vector<4x64xf32>
    %49 = arith.addf %45, %48 : vector<4x64xf32>
    %50 = math.tanh %49 : vector<4x64xf32>
    %51 = arith.subf %26, %50 : vector<4x64xf32>
    %52 = arith.mulf %44, %51 : vector<4x64xf32>
    %53 = arith.addf %50, %52 : vector<4x64xf32>
    %c4 = arith.constant 4 : index
    %c0_22 = arith.constant 0 : index
    %54 = vector.load %arg8[%c4, %c0_22] : memref<32x384xf32, #tpu.memory_space<vmem>>, vector<4x384xf32>
    %cst_23 = arith.constant dense<0.000000e+00> : vector<4x384xf32>
    %55 = tpu.matmul %53, %18, %cst_23 {dimension_numbers = #tpu.dot_dimension_numbers<[1], [0], [0], [1], [0, 0, 1, 1], [], []>} : vector<4x64xf32>, vector<64x384xf32>, vector<4x384xf32> -> vector<4x384xf32>
    %56 = vector.extract_strided_slice %54 {offsets = [0, 0], sizes = [4, 64], strides = [1, 1]} : vector<4x384xf32> to vector<4x64xf32>
    %57 = vector.extract_strided_slice %55 {offsets = [0, 0], sizes = [4, 64], strides = [1, 1]} : vector<4x384xf32> to vector<4x64xf32>
    %58 = arith.addf %56, %57 : vector<4x64xf32>
    %59 = arith.negf %58 : vector<4x64xf32>
    %60 = math.exp %59 : vector<4x64xf32>
    %cst_24 = arith.constant 1.000000e+00 : f32
    %61 = vector.broadcast %cst_24 : f32 to vector<4x64xf32>
    %62 = arith.addf %61, %60 : vector<4x64xf32>
    %63 = arith.divf %61, %62 : vector<4x64xf32>
    %64 = vector.extract_strided_slice %54 {offsets = [0, 128], sizes = [4, 64], strides = [1, 1]} : vector<4x384xf32> to vector<4x64xf32>
    %65 = vector.extract_strided_slice %55 {offsets = [0, 128], sizes = [4, 64], strides = [1, 1]} : vector<4x384xf32> to vector<4x64xf32>
    %66 = arith.addf %64, %65 : vector<4x64xf32>
    %67 = arith.negf %66 : vector<4x64xf32>
    %68 = math.exp %67 : vector<4x64xf32>
    %cst_25 = arith.constant 1.000000e+00 : f32
    %69 = vector.broadcast %cst_25 : f32 to vector<4x64xf32>
    %70 = arith.addf %69, %68 : vector<4x64xf32>
    %71 = arith.divf %69, %70 : vector<4x64xf32>
    %72 = vector.extract_strided_slice %54 {offsets = [0, 256], sizes = [4, 64], strides = [1, 1]} : vector<4x384xf32> to vector<4x64xf32>
    %73 = vector.extract_strided_slice %55 {offsets = [0, 256], sizes = [4, 64], strides = [1, 1]} : vector<4x384xf32> to vector<4x64xf32>
    %74 = arith.addf %73, %21 : vector<4x64xf32>
    %75 = arith.mulf %63, %74 : vector<4x64xf32>
    %76 = arith.addf %72, %75 : vector<4x64xf32>
    %77 = math.tanh %76 : vector<4x64xf32>
    %78 = arith.subf %53, %77 : vector<4x64xf32>
    %79 = arith.mulf %71, %78 : vector<4x64xf32>
    %80 = arith.addf %77, %79 : vector<4x64xf32>
    %c8 = arith.constant 8 : index
    %c0_26 = arith.constant 0 : index
    %81 = vector.load %arg8[%c8, %c0_26] : memref<32x384xf32, #tpu.memory_space<vmem>>, vector<4x384xf32>
    %cst_27 = arith.constant dense<0.000000e+00> : vector<4x384xf32>
    %82 = tpu.matmul %80, %18, %cst_27 {dimension_numbers = #tpu.dot_dimension_numbers<[1], [0], [0], [1], [0, 0, 1, 1], [], []>} : vector<4x64xf32>, vector<64x384xf32>, vector<4x384xf32> -> vector<4x384xf32>
    %83 = vector.extract_strided_slice %81 {offsets = [0, 0], sizes = [4, 64], strides = [1, 1]} : vector<4x384xf32> to vector<4x64xf32>
    %84 = vector.extract_strided_slice %82 {offsets = [0, 0], sizes = [4, 64], strides = [1, 1]} : vector<4x384xf32> to vector<4x64xf32>
    %85 = arith.addf %83, %84 : vector<4x64xf32>
    %86 = arith.negf %85 : vector<4x64xf32>
    %87 = math.exp %86 : vector<4x64xf32>
    %cst_28 = arith.constant 1.000000e+00 : f32
    %88 = vector.broadcast %cst_28 : f32 to vector<4x64xf32>
    %89 = arith.addf %88, %87 : vector<4x64xf32>
    %90 = arith.divf %88, %89 : vector<4x64xf32>
    %91 = vector.extract_strided_slice %81 {offsets = [0, 128], sizes = [4, 64], strides = [1, 1]} : vector<4x384xf32> to vector<4x64xf32>
    %92 = vector.extract_strided_slice %82 {offsets = [0, 128], sizes = [4, 64], strides = [1, 1]} : vector<4x384xf32> to vector<4x64xf32>
    %93 = arith.addf %91, %92 : vector<4x64xf32>
    %94 = arith.negf %93 : vector<4x64xf32>
    %95 = math.exp %94 : vector<4x64xf32>
    %cst_29 = arith.constant 1.000000e+00 : f32
    %96 = vector.broadcast %cst_29 : f32 to vector<4x64xf32>
    %97 = arith.addf %96, %95 : vector<4x64xf32>
    %98 = arith.divf %96, %97 : vector<4x64xf32>
    %99 = vector.extract_strided_slice %81 {offsets = [0, 256], sizes = [4, 64], strides = [1, 1]} : vector<4x384xf32> to vector<4x64xf32>
    %100 = vector.extract_strided_slice %82 {offsets = [0, 256], sizes = [4, 64], strides = [1, 1]} : vector<4x384xf32> to vector<4x64xf32>
    %101 = arith.addf %100, %21 : vector<4x64xf32>
    %102 = arith.mulf %90, %101 : vector<4x64xf32>
    %103 = arith.addf %99, %102 : vector<4x64xf32>
    %104 = math.tanh %103 : vector<4x64xf32>
    %105 = arith.subf %80, %104 : vector<4x64xf32>
    %106 = arith.mulf %98, %105 : vector<4x64xf32>
    %107 = arith.addf %104, %106 : vector<4x64xf32>
    %c12 = arith.constant 12 : index
    %c0_30 = arith.constant 0 : index
    %108 = vector.load %arg8[%c12, %c0_30] : memref<32x384xf32, #tpu.memory_space<vmem>>, vector<4x384xf32>
    %cst_31 = arith.constant dense<0.000000e+00> : vector<4x384xf32>
    %109 = tpu.matmul %107, %18, %cst_31 {dimension_numbers = #tpu.dot_dimension_numbers<[1], [0], [0], [1], [0, 0, 1, 1], [], []>} : vector<4x64xf32>, vector<64x384xf32>, vector<4x384xf32> -> vector<4x384xf32>
    %110 = vector.extract_strided_slice %108 {offsets = [0, 0], sizes = [4, 64], strides = [1, 1]} : vector<4x384xf32> to vector<4x64xf32>
    %111 = vector.extract_strided_slice %109 {offsets = [0, 0], sizes = [4, 64], strides = [1, 1]} : vector<4x384xf32> to vector<4x64xf32>
    %112 = arith.addf %110, %111 : vector<4x64xf32>
    %113 = arith.negf %112 : vector<4x64xf32>
    %114 = math.exp %113 : vector<4x64xf32>
    %cst_32 = arith.constant 1.000000e+00 : f32
    %115 = vector.broadcast %cst_32 : f32 to vector<4x64xf32>
    %116 = arith.addf %115, %114 : vector<4x64xf32>
    %117 = arith.divf %115, %116 : vector<4x64xf32>
    %118 = vector.extract_strided_slice %108 {offsets = [0, 128], sizes = [4, 64], strides = [1, 1]} : vector<4x384xf32> to vector<4x64xf32>
    %119 = vector.extract_strided_slice %109 {offsets = [0, 128], sizes = [4, 64], strides = [1, 1]} : vector<4x384xf32> to vector<4x64xf32>
    %120 = arith.addf %118, %119 : vector<4x64xf32>
    %121 = arith.negf %120 : vector<4x64xf32>
    %122 = math.exp %121 : vector<4x64xf32>
    %cst_33 = arith.constant 1.000000e+00 : f32
    %123 = vector.broadcast %cst_33 : f32 to vector<4x64xf32>
    %124 = arith.addf %123, %122 : vector<4x64xf32>
    %125 = arith.divf %123, %124 : vector<4x64xf32>
    %126 = vector.extract_strided_slice %108 {offsets = [0, 256], sizes = [4, 64], strides = [1, 1]} : vector<4x384xf32> to vector<4x64xf32>
    %127 = vector.extract_strided_slice %109 {offsets = [0, 256], sizes = [4, 64], strides = [1, 1]} : vector<4x384xf32> to vector<4x64xf32>
    %128 = arith.addf %127, %21 : vector<4x64xf32>
    %129 = arith.mulf %117, %128 : vector<4x64xf32>
    %130 = arith.addf %126, %129 : vector<4x64xf32>
    %131 = math.tanh %130 : vector<4x64xf32>
    %132 = arith.subf %107, %131 : vector<4x64xf32>
    %133 = arith.mulf %125, %132 : vector<4x64xf32>
    %134 = arith.addf %131, %133 : vector<4x64xf32>
    %c16 = arith.constant 16 : index
    %c0_34 = arith.constant 0 : index
    %135 = vector.load %arg8[%c16, %c0_34] : memref<32x384xf32, #tpu.memory_space<vmem>>, vector<4x384xf32>
    %cst_35 = arith.constant dense<0.000000e+00> : vector<4x384xf32>
    %136 = tpu.matmul %134, %18, %cst_35 {dimension_numbers = #tpu.dot_dimension_numbers<[1], [0], [0], [1], [0, 0, 1, 1], [], []>} : vector<4x64xf32>, vector<64x384xf32>, vector<4x384xf32> -> vector<4x384xf32>
    %137 = vector.extract_strided_slice %135 {offsets = [0, 0], sizes = [4, 64], strides = [1, 1]} : vector<4x384xf32> to vector<4x64xf32>
    %138 = vector.extract_strided_slice %136 {offsets = [0, 0], sizes = [4, 64], strides = [1, 1]} : vector<4x384xf32> to vector<4x64xf32>
    %139 = arith.addf %137, %138 : vector<4x64xf32>
    %140 = arith.negf %139 : vector<4x64xf32>
    %141 = math.exp %140 : vector<4x64xf32>
    %cst_36 = arith.constant 1.000000e+00 : f32
    %142 = vector.broadcast %cst_36 : f32 to vector<4x64xf32>
    %143 = arith.addf %142, %141 : vector<4x64xf32>
    %144 = arith.divf %142, %143 : vector<4x64xf32>
    %145 = vector.extract_strided_slice %135 {offsets = [0, 128], sizes = [4, 64], strides = [1, 1]} : vector<4x384xf32> to vector<4x64xf32>
    %146 = vector.extract_strided_slice %136 {offsets = [0, 128], sizes = [4, 64], strides = [1, 1]} : vector<4x384xf32> to vector<4x64xf32>
    %147 = arith.addf %145, %146 : vector<4x64xf32>
    %148 = arith.negf %147 : vector<4x64xf32>
    %149 = math.exp %148 : vector<4x64xf32>
    %cst_37 = arith.constant 1.000000e+00 : f32
    %150 = vector.broadcast %cst_37 : f32 to vector<4x64xf32>
    %151 = arith.addf %150, %149 : vector<4x64xf32>
    %152 = arith.divf %150, %151 : vector<4x64xf32>
    %153 = vector.extract_strided_slice %135 {offsets = [0, 256], sizes = [4, 64], strides = [1, 1]} : vector<4x384xf32> to vector<4x64xf32>
    %154 = vector.extract_strided_slice %136 {offsets = [0, 256], sizes = [4, 64], strides = [1, 1]} : vector<4x384xf32> to vector<4x64xf32>
    %155 = arith.addf %154, %21 : vector<4x64xf32>
    %156 = arith.mulf %144, %155 : vector<4x64xf32>
    %157 = arith.addf %153, %156 : vector<4x64xf32>
    %158 = math.tanh %157 : vector<4x64xf32>
    %159 = arith.subf %134, %158 : vector<4x64xf32>
    %160 = arith.mulf %152, %159 : vector<4x64xf32>
    %161 = arith.addf %158, %160 : vector<4x64xf32>
    %c20 = arith.constant 20 : index
    %c0_38 = arith.constant 0 : index
    %162 = vector.load %arg8[%c20, %c0_38] : memref<32x384xf32, #tpu.memory_space<vmem>>, vector<4x384xf32>
    %cst_39 = arith.constant dense<0.000000e+00> : vector<4x384xf32>
    %163 = tpu.matmul %161, %18, %cst_39 {dimension_numbers = #tpu.dot_dimension_numbers<[1], [0], [0], [1], [0, 0, 1, 1], [], []>} : vector<4x64xf32>, vector<64x384xf32>, vector<4x384xf32> -> vector<4x384xf32>
    %164 = vector.extract_strided_slice %162 {offsets = [0, 0], sizes = [4, 64], strides = [1, 1]} : vector<4x384xf32> to vector<4x64xf32>
    %165 = vector.extract_strided_slice %163 {offsets = [0, 0], sizes = [4, 64], strides = [1, 1]} : vector<4x384xf32> to vector<4x64xf32>
    %166 = arith.addf %164, %165 : vector<4x64xf32>
    %167 = arith.negf %166 : vector<4x64xf32>
    %168 = math.exp %167 : vector<4x64xf32>
    %cst_40 = arith.constant 1.000000e+00 : f32
    %169 = vector.broadcast %cst_40 : f32 to vector<4x64xf32>
    %170 = arith.addf %169, %168 : vector<4x64xf32>
    %171 = arith.divf %169, %170 : vector<4x64xf32>
    %172 = vector.extract_strided_slice %162 {offsets = [0, 128], sizes = [4, 64], strides = [1, 1]} : vector<4x384xf32> to vector<4x64xf32>
    %173 = vector.extract_strided_slice %163 {offsets = [0, 128], sizes = [4, 64], strides = [1, 1]} : vector<4x384xf32> to vector<4x64xf32>
    %174 = arith.addf %172, %173 : vector<4x64xf32>
    %175 = arith.negf %174 : vector<4x64xf32>
    %176 = math.exp %175 : vector<4x64xf32>
    %cst_41 = arith.constant 1.000000e+00 : f32
    %177 = vector.broadcast %cst_41 : f32 to vector<4x64xf32>
    %178 = arith.addf %177, %176 : vector<4x64xf32>
    %179 = arith.divf %177, %178 : vector<4x64xf32>
    %180 = vector.extract_strided_slice %162 {offsets = [0, 256], sizes = [4, 64], strides = [1, 1]} : vector<4x384xf32> to vector<4x64xf32>
    %181 = vector.extract_strided_slice %163 {offsets = [0, 256], sizes = [4, 64], strides = [1, 1]} : vector<4x384xf32> to vector<4x64xf32>
    %182 = arith.addf %181, %21 : vector<4x64xf32>
    %183 = arith.mulf %171, %182 : vector<4x64xf32>
    %184 = arith.addf %180, %183 : vector<4x64xf32>
    %185 = math.tanh %184 : vector<4x64xf32>
    %186 = arith.subf %161, %185 : vector<4x64xf32>
    %187 = arith.mulf %179, %186 : vector<4x64xf32>
    %188 = arith.addf %185, %187 : vector<4x64xf32>
    %c24 = arith.constant 24 : index
    %c0_42 = arith.constant 0 : index
    %189 = vector.load %arg8[%c24, %c0_42] : memref<32x384xf32, #tpu.memory_space<vmem>>, vector<4x384xf32>
    %cst_43 = arith.constant dense<0.000000e+00> : vector<4x384xf32>
    %190 = tpu.matmul %188, %18, %cst_43 {dimension_numbers = #tpu.dot_dimension_numbers<[1], [0], [0], [1], [0, 0, 1, 1], [], []>} : vector<4x64xf32>, vector<64x384xf32>, vector<4x384xf32> -> vector<4x384xf32>
    %191 = vector.extract_strided_slice %189 {offsets = [0, 0], sizes = [4, 64], strides = [1, 1]} : vector<4x384xf32> to vector<4x64xf32>
    %192 = vector.extract_strided_slice %190 {offsets = [0, 0], sizes = [4, 64], strides = [1, 1]} : vector<4x384xf32> to vector<4x64xf32>
    %193 = arith.addf %191, %192 : vector<4x64xf32>
    %194 = arith.negf %193 : vector<4x64xf32>
    %195 = math.exp %194 : vector<4x64xf32>
    %cst_44 = arith.constant 1.000000e+00 : f32
    %196 = vector.broadcast %cst_44 : f32 to vector<4x64xf32>
    %197 = arith.addf %196, %195 : vector<4x64xf32>
    %198 = arith.divf %196, %197 : vector<4x64xf32>
    %199 = vector.extract_strided_slice %189 {offsets = [0, 128], sizes = [4, 64], strides = [1, 1]} : vector<4x384xf32> to vector<4x64xf32>
    %200 = vector.extract_strided_slice %190 {offsets = [0, 128], sizes = [4, 64], strides = [1, 1]} : vector<4x384xf32> to vector<4x64xf32>
    %201 = arith.addf %199, %200 : vector<4x64xf32>
    %202 = arith.negf %201 : vector<4x64xf32>
    %203 = math.exp %202 : vector<4x64xf32>
    %cst_45 = arith.constant 1.000000e+00 : f32
    %204 = vector.broadcast %cst_45 : f32 to vector<4x64xf32>
    %205 = arith.addf %204, %203 : vector<4x64xf32>
    %206 = arith.divf %204, %205 : vector<4x64xf32>
    %207 = vector.extract_strided_slice %189 {offsets = [0, 256], sizes = [4, 64], strides = [1, 1]} : vector<4x384xf32> to vector<4x64xf32>
    %208 = vector.extract_strided_slice %190 {offsets = [0, 256], sizes = [4, 64], strides = [1, 1]} : vector<4x384xf32> to vector<4x64xf32>
    %209 = arith.addf %208, %21 : vector<4x64xf32>
    %210 = arith.mulf %198, %209 : vector<4x64xf32>
    %211 = arith.addf %207, %210 : vector<4x64xf32>
    %212 = math.tanh %211 : vector<4x64xf32>
    %213 = arith.subf %188, %212 : vector<4x64xf32>
    %214 = arith.mulf %206, %213 : vector<4x64xf32>
    %215 = arith.addf %212, %214 : vector<4x64xf32>
    %c28 = arith.constant 28 : index
    %c0_46 = arith.constant 0 : index
    %216 = vector.load %arg8[%c28, %c0_46] : memref<32x384xf32, #tpu.memory_space<vmem>>, vector<4x384xf32>
    %cst_47 = arith.constant dense<0.000000e+00> : vector<4x384xf32>
    %217 = tpu.matmul %215, %18, %cst_47 {dimension_numbers = #tpu.dot_dimension_numbers<[1], [0], [0], [1], [0, 0, 1, 1], [], []>} : vector<4x64xf32>, vector<64x384xf32>, vector<4x384xf32> -> vector<4x384xf32>
    %218 = vector.extract_strided_slice %216 {offsets = [0, 0], sizes = [4, 64], strides = [1, 1]} : vector<4x384xf32> to vector<4x64xf32>
    %219 = vector.extract_strided_slice %217 {offsets = [0, 0], sizes = [4, 64], strides = [1, 1]} : vector<4x384xf32> to vector<4x64xf32>
    %220 = arith.addf %218, %219 : vector<4x64xf32>
    %221 = arith.negf %220 : vector<4x64xf32>
    %222 = math.exp %221 : vector<4x64xf32>
    %cst_48 = arith.constant 1.000000e+00 : f32
    %223 = vector.broadcast %cst_48 : f32 to vector<4x64xf32>
    %224 = arith.addf %223, %222 : vector<4x64xf32>
    %225 = arith.divf %223, %224 : vector<4x64xf32>
    %226 = vector.extract_strided_slice %216 {offsets = [0, 128], sizes = [4, 64], strides = [1, 1]} : vector<4x384xf32> to vector<4x64xf32>
    %227 = vector.extract_strided_slice %217 {offsets = [0, 128], sizes = [4, 64], strides = [1, 1]} : vector<4x384xf32> to vector<4x64xf32>
    %228 = arith.addf %226, %227 : vector<4x64xf32>
    %229 = arith.negf %228 : vector<4x64xf32>
    %230 = math.exp %229 : vector<4x64xf32>
    %cst_49 = arith.constant 1.000000e+00 : f32
    %231 = vector.broadcast %cst_49 : f32 to vector<4x64xf32>
    %232 = arith.addf %231, %230 : vector<4x64xf32>
    %233 = arith.divf %231, %232 : vector<4x64xf32>
    %234 = vector.extract_strided_slice %216 {offsets = [0, 256], sizes = [4, 64], strides = [1, 1]} : vector<4x384xf32> to vector<4x64xf32>
    %235 = vector.extract_strided_slice %217 {offsets = [0, 256], sizes = [4, 64], strides = [1, 1]} : vector<4x384xf32> to vector<4x64xf32>
    %236 = arith.addf %235, %21 : vector<4x64xf32>
    %237 = arith.mulf %225, %236 : vector<4x64xf32>
    %238 = arith.addf %234, %237 : vector<4x64xf32>
    %239 = math.tanh %238 : vector<4x64xf32>
    %240 = arith.subf %215, %239 : vector<4x64xf32>
    %241 = arith.mulf %233, %240 : vector<4x64xf32>
    %242 = arith.addf %239, %241 : vector<4x64xf32>
    %243 = tpu.iota {dimensions = array<i32: 2>} : vector<8x4x64xi32>
    %244 = vector.shape_cast %53 : vector<4x64xf32> to vector<1x4x64xf32>
    %245 = vector.shape_cast %80 : vector<4x64xf32> to vector<1x4x64xf32>
    %246 = vector.shape_cast %107 : vector<4x64xf32> to vector<1x4x64xf32>
    %247 = vector.shape_cast %134 : vector<4x64xf32> to vector<1x4x64xf32>
    %248 = vector.shape_cast %161 : vector<4x64xf32> to vector<1x4x64xf32>
    %249 = vector.shape_cast %188 : vector<4x64xf32> to vector<1x4x64xf32>
    %250 = vector.shape_cast %215 : vector<4x64xf32> to vector<1x4x64xf32>
    %251 = vector.shape_cast %242 : vector<4x64xf32> to vector<1x4x64xf32>
    %252 = tpu.concatenate %244, %245, %246, %247, %248, %249, %250, %251 in 0 : vector<1x4x64xf32>, vector<1x4x64xf32>, vector<1x4x64xf32>, vector<1x4x64xf32>, vector<1x4x64xf32>, vector<1x4x64xf32>, vector<1x4x64xf32>, vector<1x4x64xf32> -> vector<8x4x64xf32>
    %253 = vector.shape_cast %242 : vector<4x64xf32> to vector<1x4x64xf32>
    %254 = vector.shape_cast %215 : vector<4x64xf32> to vector<1x4x64xf32>
    %255 = vector.shape_cast %188 : vector<4x64xf32> to vector<1x4x64xf32>
    %256 = vector.shape_cast %161 : vector<4x64xf32> to vector<1x4x64xf32>
    %257 = vector.shape_cast %134 : vector<4x64xf32> to vector<1x4x64xf32>
    %258 = vector.shape_cast %107 : vector<4x64xf32> to vector<1x4x64xf32>
    %259 = vector.shape_cast %80 : vector<4x64xf32> to vector<1x4x64xf32>
    %260 = vector.shape_cast %53 : vector<4x64xf32> to vector<1x4x64xf32>
    %261 = tpu.concatenate %253, %254, %255, %256, %257, %258, %259, %260 in 0 : vector<1x4x64xf32>, vector<1x4x64xf32>, vector<1x4x64xf32>, vector<1x4x64xf32>, vector<1x4x64xf32>, vector<1x4x64xf32>, vector<1x4x64xf32>, vector<1x4x64xf32> -> vector<8x4x64xf32>
    %c32_i32 = arith.constant 32 : i32
    %262 = vector.broadcast %c32_i32 : i32 to vector<8x4x64xi32>
    %263 = arith.cmpi slt, %243, %262 : vector<8x4x64xi32>
    %264 = arith.select %263, %252, %261 : vector<8x4x64xi1>, vector<8x4x64xf32>
    %c0_50 = arith.constant 0 : index
    %c0_51 = arith.constant 0 : index
    %c0_52 = arith.constant 0 : index
    %265 = vector.load %arg6[%c0_50, %c0_51, %c0_52] : memref<8x4x64xf32, #tpu.memory_space<vmem>>, vector<8x4x64xf32>
    tpu.vector_store %arg6[%c0_50, %c0_51, %c0_52], %264 {strides = array<i32>} : memref<8x4x64xf32, #tpu.memory_space<vmem>>, vector<8x4x64xf32>,
    %266 = vector.extract_strided_slice %242 {offsets = [0, 0], sizes = [4, 32], strides = [1, 1]} : vector<4x64xf32> to vector<4x32xf32>
    %c0_53 = arith.constant 0 : index
    %c0_54 = arith.constant 0 : index
    %c0_55 = arith.constant 0 : index
    %267 = vector.load %arg7[%c0_53, %c0_54, %c0_55] : memref<2x4x32xf32, #tpu.memory_space<vmem>>, vector<1x4x32xf32>
    %268 = vector.shape_cast %267 : vector<1x4x32xf32> to vector<4x32xf32>
    %269 = vector.shape_cast %266 : vector<4x32xf32> to vector<1x4x32xf32>
    tpu.vector_store %arg7[%c0_53, %c0_54, %c0_55], %269 {strides = array<i32>} : memref<2x4x32xf32, #tpu.memory_space<vmem>>, vector<1x4x32xf32>,
    %270 = vector.extract_strided_slice %242 {offsets = [0, 32], sizes = [4, 32], strides = [1, 1]} : vector<4x64xf32> to vector<4x32xf32>
    %c1_56 = arith.constant 1 : index
    %c0_57 = arith.constant 0 : index
    %c0_58 = arith.constant 0 : index
    %271 = vector.load %arg7[%c1_56, %c0_57, %c0_58] : memref<2x4x32xf32, #tpu.memory_space<vmem>>, vector<1x4x32xf32>
    %272 = vector.shape_cast %271 : vector<1x4x32xf32> to vector<4x32xf32>
    %273 = vector.shape_cast %270 : vector<4x32xf32> to vector<1x4x32xf32>
    tpu.vector_store %arg7[%c1_56, %c0_57, %c0_58], %273 {strides = array<i32>} : memref<2x4x32xf32, #tpu.memory_space<vmem>>, vector<1x4x32xf32>,
    return
  }
}

</mosaic_0001>

<bundles_post_ra>
// kernel: encoder_bigru_forward.1
= control target key start
LH: loop header
LB: loop body
LE: loop exit
PB: predicated region body
PF: predicated region fallthrough
CT: control target
= control target key end

     0   :  { %13 = vsyncpa [#allocation4], 0  ;;  %s3395_s0 = inlined_call_operand.vmem [shape: s32[32,2], index: 0, kind: input, shape index: {}]   ;;  %s3396_s1 = inlined_call_operand.vmem [shape: f32[2,4,32], index: 1, kind: input, shape index: {}]   ;;  %s3397_s2 = inlined_call_operand.hbm [shape: f32[56,384], index: 2, kind: input, shape index: {}]   ;;  %s3398_s3 = inlined_call_operand.hbm [shape: f32[56,384], index: 3, kind: input, shape index: {}]   ;;  %s3399_s4 = inlined_call_operand.hbm [shape: f32[64,384], index: 4, kind: input, shape index: {}]   ;;  %s3400_s5 = inlined_call_operand.vmem [shape: f32[1,64], index: 5, kind: input, shape index: {}]   ;;  %s3401_s6 = inlined_call_operand.hbm [shape: f32[8,4,64], index: 6, kind: output, shape index: {0}]   ;;  %s3402_s7 = inlined_call_operand.hbm [shape: f32[2,4,32], index: 7, kind: output, shape index: {1}]  }
   0x1   :  { %14 = vsyncpa [#allocation7], 0 }
   0x2   :  { %15 = vsyncpa [#allocation5], 0 }
   0x3   :  { %16 = vsyncpa [#allocation11], 0  ;;  %s2943_s24 = smov [#allocation6]   ;;  %s2944_s26 = smov [#allocation3]  }
   0x4   :  { %s38_s25 = sshll.u32 %s2943_s24, 4  ;;  %s26_s27 = sshll.u32 %s2944_s26, 4  ;;  %s39_s25 = int_to_ptr.vmem [resolvable:$true] %s38_s25  ;;  %s2999_s27 = int_to_ptr.vmem [resolvable:$true] %s26_s27 }
   0x5   :  { %s2825_s30 = scalar_lea.hbm %s3398_s3, 2688 }
   0x6   :  { %p2826_p0 = scmp.ne.s32.totalorder %s3398_s3, %s2825_s30  ;;  %p2829_p1 = scmp.lt.u32.totalorder %s2825_s30, %s3398_s3 }
   0x8   :  { %p2831_p2 = pnand %p2829_p1, %p2826_p0 }
   0xa   :  { %2834 = shalt.err (!%p2831_p2)
}
   0xb   :  { %s2835_s12 = scalar_lea.vmem %s39_s25, 2688  ;;  %p2840_p4 = scmp.lt.s32.totalorder %s39_s25, %s39_s25 }
   0xc   :  { %p2836_p3 = scmp.ne.s32.totalorder %s39_s25, %s2835_s12  ;;  %p2841_p5 = scmp.lt.s32.totalorder %s2835_s12, %s2835_s12 }
   0xe   :  { %p2842_p6 = por %p2841_p5, %p2840_p4 }
  0x10   :  { %p2843_p7 = pnand %p2842_p6, %p2836_p3 }
  0x12   :  { %2846 = shalt.err (!%p2843_p7)
}
  0x13   :  { %s2945_s13 = smov 384   ;;  %s2946_s14 = smov 24  }
  0x14   :  { %44 = dma.hbm_to_vmem [thread:$0]  %s3398_s3, 2688, %s39_s25, [#allocation7], %s2945_s13, %s2945_s13, %s2946_s14  }
  0x15   :  { %s2847_s19 = scalar_lea.hbm %s3397_s2, 2688 }
  0x16   :  { %p2848_p8 = scmp.ne.s32.totalorder %s3397_s2, %s2847_s19  ;;  %p2851_p9 = scmp.lt.u32.totalorder %s2847_s19, %s3397_s2 }
  0x18   :  { %p2853_p10 = pnand %p2851_p9, %p2848_p8 }
  0x1a   :  { %2856 = shalt.err (!%p2853_p10)
}
  0x1b   :  { %s2857_s24 = scalar_lea.vmem %s2999_s27, 2688  ;;  %p2862_p12 = scmp.lt.s32.totalorder %s2999_s27, %s2999_s27 }
  0x1c   :  { %p2858_p11 = scmp.ne.s32.totalorder %s2999_s27, %s2857_s24  ;;  %p2863_p13 = scmp.lt.s32.totalorder %s2857_s24, %s2857_s24 }
  0x1e   :  { %p2864_p0 = por %p2863_p13, %p2862_p12 }
  0x20   :  { %p2865_p1 = pnand %p2864_p0, %p2858_p11 }
  0x22   :  { %2868 = shalt.err (!%p2865_p1)
}
  0x23   :  { %32 = dma.hbm_to_vmem [thread:$0]  %s3397_s2, 2688, %s2999_s27, [#allocation4], %s2945_s13, %s2945_s13, %s2946_s14  }
  0x24   :  { %s2947_s26 = smov [#allocation8]   ;;  %s2869_s8 = scalar_lea.hbm %s3399_s4, 3072 }
  0x25   :  { %s50_s28 = sshll.u32 %s2947_s26, 4  ;;  %p2870_p2 = scmp.ne.s32.totalorder %s3399_s4, %s2869_s8  ;;  %s51_s28 = int_to_ptr.vmem [resolvable:$true] %s50_s28 }
  0x26   :  { %p2873_p3 = scmp.lt.u32.totalorder %s2869_s8, %s3399_s4 }
  0x28   :  { %p2875_p4 = pnand %p2873_p3, %p2870_p2 }
  0x2a   :  { %2878 = shalt.err (!%p2875_p4)
}
  0x2b   :  { %s2879_s15 = scalar_lea.vmem %s51_s28, 3072  ;;  %p2884_p6 = scmp.lt.s32.totalorder %s51_s28, %s51_s28 }
  0x2c   :  { %p2880_p5 = scmp.ne.s32.totalorder %s51_s28, %s2879_s15  ;;  %p2885_p7 = scmp.lt.s32.totalorder %s2879_s15, %s2879_s15 }
  0x2e   :  { %p2886_p8 = por %p2885_p7, %p2884_p6 }
  0x30   :  { %p2887_p9 = pnand %p2886_p8, %p2880_p5 }
  0x32   :  { %2890 = shalt.err (!%p2887_p9)
}
  0x33   :  { %56 = dma.hbm_to_vmem [thread:$0]  %s3399_s4, 3072, %s51_s28, [#allocation7], %s2945_s13, %s2945_s13, %s2946_s14  }
  0x34   :  { %2935 = dma.done.wait [#allocation4], 2688  }
  0x35   :  { %2936 = vsyncadd [#allocation4], 4294964608 }
  0x36   :  { %2937 = dma.done.wait [#allocation7], 5760  }
  0x37   :  { %2938 = vsyncadd [#allocation7], 4294961536  ;;  %v2948_v0 = vmov 1   ;;  %v2949_v1 = vmov 0.0   ;;  %v68_v2 = vld [vmem:[%s3395_s0] sm:$0xff]  ;;  %v70_v3 = vld [vmem:[%s3395_s0 + $0x10] sm:$0xff]  ;;  %v72_v44 = vlaneseq }
  0x38   :  { %2740 = vset.pattern.permute.xlu0 %v2948_v0  ;;  %2741 = vset.pattern.permute.xlu1 %v2948_v0  ;;  %v69_v4 = vld [vmem:[%s3395_s0 + $0x8] sm:$0xff]  ;;  %v71_v5 = vld [vmem:[%s3395_s0 + $0x18] sm:$0xff]  ;;  %v144_v6 = vld [vmem:[#allocation6 + $0x8] sm:$0xff]  ;;  %v2950_v32 = vmov 0   ;;  %s2951_s22 = smov 32   ;;  %vm164_vm0 = vcmask 457728  }
  0x39   :  { %241 = vmatprep.mubr.f32.mxu0 %v2949_v1  ;;  %99 = vperm.xlu0 %2740, %v68_v2   ;;  %v147_v7 = vld [vmem:[#allocation6 + $0x20] sm:$0xff]  ;;  %v146_v9 = vld [vmem:[#allocation6 + $0x18] sm:$0xff]  ;;  %v145_v12 = vld [vmem:[#allocation6 + $0x10] sm:$0xff]  ;;  %v3070_v45 = vand.u32 127, %v72_v44  ;;  %vm587_vm9 = vcmask 261120   ;;  %vm2953_vm10 = vmmov 0  }
  0x3a   :  { %105 = vperm.xlu1 %2741, %v70_v3   ;;  %v143_v8 = vld [vmem:[#allocation6] sm:$0xff]  ;;  %v2440_v10 = vpack.c.bf16 %v147_v7, %v144_v6  ;;  %v148_v13 = vld [vmem:[#allocation6 + $0x28] sm:$0xff]  ;;  %v150_v14 = vld [vmem:[#allocation6 + $0x38] sm:$0xff]  ;;  %vm592_vm11 = vcmask 523264   ;;  %vm2042_vm13 = vcmask 519168   ;;  %vm2051_vm14 = vcmask 261124  }
  0x3b   :  { %v2442_v11 = vpack.c.bf16 %v146_v9, %v143_v8  ;;  %v2452_v15 = vpack.c.bf16 %v148_v13, %v145_v12  ;;  %v153_v16 = vld [vmem:[#allocation6 + $0x50] sm:$0xff]  ;;  %v152_v18 = vld [vmem:[#allocation6 + $0x48] sm:$0xff]  ;;  %v151_v20 = vld [vmem:[#allocation6 + $0x40] sm:$0xff]  ;;  %vm2025_vm12 = vcmp.lt.s32.totalorder %v3070_v45, 32  ;;  %s2955_s26 = smov 96  }
  0x3c   :  { %v149_v17 = vld [vmem:[#allocation6 + $0x30] sm:$0xff]  ;;  %v2444_v19 = vpack.c.bf16 %v153_v16, %v150_v14  ;;  %v154_v21 = vld [vmem:[#allocation6 + $0x58] sm:$0xff]  ;;  %v156_v22 = vld [vmem:[#allocation6 + $0x68] sm:$0xff]  ;;  %2441 = vmatprep.subr.bf16.mxu0 %v2440_v10 }
  0x3d   :  { %102 = vperm.xlu0 %2740, %v69_v4   ;;  %2453 = vmatprep.subr.bf16.mxu1 %v2452_v15  ;;  %v2456_v23 = vpack.c.bf16 %v154_v21, %v151_v20  ;;  %v159_v24 = vld [vmem:[#allocation6 + $0x80] sm:$0xff]  ;;  %v2446_v25 = vpack.c.bf16 %v152_v18, %v149_v17  ;;  %v157_v26 = vld [vmem:[#allocation6 + $0x70] sm:$0xff]  ;;  %v160_v27 = vld [vmem:[#allocation6 + $0x88] sm:$0xff] }
  0x3e   :  { %108 = vperm.xlu1 %2741, %v71_v5   ;;  %2443 = vmatpush1.bf16.msra.mxu0 %v2442_v11  ;;  %v2448_v28 = vpack.c.bf16 %v159_v24, %v156_v22  ;;  %v155_v29 = vld [vmem:[#allocation6 + $0x60] sm:$0xff]  ;;  %v158_v30 = vld [vmem:[#allocation6 + $0x78] sm:$0xff]  ;;  %v2460_v31 = vpack.c.bf16 %v160_v27, %v157_v26  ;;  %v124_v38 = vld [vmem:[#allocation3 + $0x10] sm:$0xff] }
  0x3f   :  { %2455 = vmatpush3.bf16.msra.mxu1 %v2452_v15  ;;  %2445 = vmatprep.subr.bf16.mxu0 %v2444_v19  ;;  %v2450_v33 = vpack.c.bf16 %v158_v30, %v155_v29  ;;  %v162_v34 = vld [vmem:[#allocation6 + $0x98] sm:$0xff]  ;;  %v163_v35 = vld [vmem:[#allocation6 + $0xa0] sm:$0xff]  ;;  %v161_v41 = vld [vmem:[#allocation6 + $0x90] sm:$0xff] }
  0x40   :  { %2457 = vmatprep.subr.bf16.mxu1 %v2456_v23  ;;  %v123_v36 = vld [vmem:[#allocation3 + $0x8] sm:$0xff]  ;;  %v126_v37 = vld [vmem:[#allocation3 + $0x20] sm:$0xff]  ;;  %v125_v47 = vld [vmem:[#allocation3 + $0x18] sm:$0xff] }
  0x41   :  { %2742 = vset.pattern.permute.xlu0 %v2950_v32  ;;  %v127_v39 = vld [vmem:[#allocation3 + $0x28] sm:$0xff]  ;;  %v2117_v40 = vld [vmem:[%s3396_s1 + $0x4] sm:$0xf]  ;;  %v2464_v42 = vpack.c.bf16 %v126_v37, %v123_v36  ;;  %v129_v48 = vld [vmem:[#allocation3 + $0x38] sm:$0xff] }
  0x42   :  { %2743 = vset.pattern.permute.xlu1 %v2950_v32  ;;  %75 = vperm.xlu0 %2742, %v68_v2   ;;  %v2476_v43 = vpack.c.bf16 %v127_v39, %v124_v38  ;;  %v122_v46 = vld [vmem:[#allocation3] sm:$0xff]  ;;  %v132_v49 = vld [vmem:[#allocation3 + $0x50] sm:$0xff]  ;;  %v131_v56 = vld [vmem:[#allocation3 + $0x48] sm:$0xff] }
  0x43   :  { %78 = vperm.xlu1 %2743, %v69_v4   ;;  %2447 = vmatpush1.bf16.msra.mxu0 %v2446_v25  ;;  %v2466_v52 = vpack.c.bf16 %v125_v47, %v122_v46  ;;  %v2468_v53 = vpack.c.bf16 %v132_v49, %v129_v48  ;;  %v128_v54 = vld [vmem:[#allocation3 + $0x30] sm:$0xff]  ;;  %v130_v57 = vld [vmem:[#allocation3 + $0x40] sm:$0xff]  ;;  %v133_v58 = vld [vmem:[#allocation3 + $0x58] sm:$0xff] }
  0x44   :  { %2459 = vmatpush3.bf16.msra.mxu1 %v2456_v23  ;;  %2449 = vmatprep.subr.bf16.mxu0 %v2448_v28  ;;  %v135_v59 = vld [vmem:[#allocation3 + $0x68] sm:$0xff]  ;;  %v138_v60 = vld [vmem:[#allocation3 + $0x80] sm:$0xff]  ;;  %v2470_v63 = vpack.c.bf16 %v131_v56, %v128_v54  ;;  %v136_v6 = vld [vmem:[#allocation3 + $0x70] sm:$0xff] }
  0x45   :  { %2461 = vmatprep.subr.bf16.mxu1 %v2460_v31  ;;  %v134_v2 = vld [vmem:[#allocation3 + $0x60] sm:$0xff]  ;;  %v2472_v4 = vpack.c.bf16 %v138_v60, %v135_v59  ;;  %v139_v7 = vld [vmem:[#allocation3 + $0x88] sm:$0xff]  ;;  %v141_v15 = vld [vmem:[#allocation3 + $0x98] sm:$0xff] }
  0x46   :  { %84 = vperm.xlu0 %2742, %v71_v5   ;;  %v137_v5 = vld [vmem:[#allocation3 + $0x78] sm:$0xff]  ;;  %v2484_v13 = vpack.c.bf16 %v139_v7, %v136_v6  ;;  %v140_v17 = vld [vmem:[#allocation3 + $0x90] sm:$0xff]  ;;  %v551_v18 = vld [vmem:[#allocation8 + $0x10] sm:$0xff] }
  0x47   :  { %81 = vperm.xlu1 %2743, %v70_v3   ;;  %2451 = vmatpush1.bf16.msra.mxu0 %v2450_v33  ;;  %v2474_v12 = vpack.c.bf16 %v137_v5, %v134_v2  ;;  %v554_v19 = vld [vmem:[#allocation8 + $0x28] sm:$0xff]  ;;  %v142_v20 = vld [vmem:[#allocation3 + $0xa0] sm:$0xff]  ;;  %v553_v22 = vld [vmem:[#allocation8 + $0x20] sm:$0xff] }
  0x48   :  { %2463 = vmatpush3.bf16.msra.mxu1 %v2460_v31  ;;  %189 = vmatprep.subr.mxu0 %v162_v34  ;;  %v550_v21 = vld [vmem:[#allocation8 + $0x8] sm:$0xff]  ;;  %v549_v23 = vld [vmem:[#allocation8] sm:$0xff]  ;;  %v552_v24 = vld [vmem:[#allocation8 + $0x18] sm:$0xff]  ;;  %v3097_v25 = vpack.c.bf16 %v554_v19, %v551_v18  ;;  %v2952_v31 = vmov 0.0|0.0  }
  0x49   :  { %2260 = vmatprep.subr.mxu1 %v163_v35  ;;  %v3099_v26 = vpack.c.bf16 %v553_v22, %v550_v21  ;;  %v556_v27 = vld [vmem:[#allocation8 + $0x38] sm:$0xff]  ;;  %v559_v28 = vld [vmem:[#allocation8 + $0x50] sm:$0xff]  ;;  %v3103_v32 = vpack.c.bf16 %v552_v24, %v549_v23  ;;  %v557_v33 = vld [vmem:[#allocation8 + $0x40] sm:$0xff] }
  0x4a   :  { %2744 = vset.pattern.permute.xlu0 %v2948_v0  ;;  %v2480_v0 = vpack.c.bf16 %v133_v58, %v130_v57  ;;  %v560_v34 = vld [vmem:[#allocation8 + $0x58] sm:$0xff]  ;;  %v555_v36 = vld [vmem:[#allocation8 + $0x30] sm:$0xff]  ;;  %v558_v37 = vld [vmem:[#allocation8 + $0x48] sm:$0xff]  ;;  %v3108_v38 = vpack.c.bf16 %v559_v28, %v556_v27 }
  0x4b   :  { %584 = vrot.lane.b32.xlu1 %v2117_v40, %s2951_s22  ;;  %190 = vmatpush1.msra.mxu0 %v161_v41  ;;  %v562_v39 = vld [vmem:[#allocation8 + $0x68] sm:$0xff]  ;;  %v565_v40 = vld [vmem:[#allocation8 + $0x80] sm:$0xff]  ;;  %v3113_v41 = vpack.c.bf16 %v560_v34, %v557_v33  ;;  %v564_v48 = vld [vmem:[#allocation8 + $0x78] sm:$0xff] }
  0x4c   :  { %2261 = vmatpush3.msra.mxu1 %v163_v35  ;;  %2465 = vmatprep.subr.bf16.mxu0 %v2464_v42  ;;  %v3117_v42 = vpack.c.bf16 %v558_v37, %v555_v36  ;;  %v566_v44 = vld [vmem:[#allocation8 + $0x88] sm:$0xff]  ;;  %v3121_v46 = vpack.c.bf16 %v565_v40, %v562_v39  ;;  %v561_v47 = vld [vmem:[#allocation8 + $0x60] sm:$0xff]  ;;  %v567_v57 = vld [vmem:[#allocation8 + $0x90] sm:$0xff] }
  0x4d   :  { %2477 = vmatprep.subr.bf16.mxu1 %v2476_v43  ;;  %v569_v54 = vld [vmem:[#allocation8 + $0xa0] sm:$0xff]  ;;  %v570_v58 = vld [vmem:[#allocation8 + $0xa8] sm:$0xff]  ;;  %v580_v60 = vld [vmem:[%s3396_s1] sm:$0xf] }
  0x4e   :  { %v3187_v27 = vld [vmem:[%s3400_s5] ss:$0 sm:$0xff]  ;;  %s2954_s5 = smov [#allocation9]  }
  0x4f   :  { %s2063_s25 = sshll.u32 %s2954_s5, 4  ;;  %s2064_s25 = int_to_ptr.vmem [resolvable:$true] %s2063_s25 }
  0x50   :  { %s2891_s28 = scalar_lea.vmem %s2064_s25, 512  ;;  %p2896_p11 = scmp.lt.s32.totalorder %s2064_s25, %s2064_s25 }
  0x51   :  { %p2892_p10 = scmp.ne.s32.totalorder %s2064_s25, %s2891_s28  ;;  %p2897_p12 = scmp.lt.s32.totalorder %s2891_s28, %s2891_s28 }
  0x53   :  { %p2898_p13 = por %p2897_p12, %p2896_p11 }
  0x55   :  { %p2899_p0 = pnand %p2898_p13, %p2892_p10 }
  0xb8   :  { %v100_v50 = vpop.permute.xlu0 %99 }
  0xb9   :  { %v106_v51 = vpop.permute.xlu1 %105  ;;  %vm110_vm1 = vcmp.eq.s32.totalorder %v100_v50, %v3070_v45  ;;  %v568_v50 = vld [vmem:[#allocation8 + $0x98] sm:$0xff] }
  0xba   :  { %v2096_v55 = vsel %vm110_vm1, 1.0, %v2949_v1  ;;  %vm112_vm2 = vcmp.eq.s32.totalorder %v106_v51, %v3070_v45  ;;  %v571_v51 = vld [vmem:[#allocation8 + $0xb0] sm:$0xff] }
  0xbb   :  { %2100 = vmatmul.mubr.msk.f32.vlgmr.msra.gmra.mrb[0].mxu0 %vm164_vm0, %v2096_v55  ;;  %2262 = vmatprep.mubr.msk.f32.mxu1 %vm164_vm0, %v2096_v55  ;;  %v2098_v8 = vsel %vm112_vm2, 1.0, %v2949_v1  ;;  %v572_v55 = vld [vmem:[#allocation8 + $0xb8] sm:$0xff]  ;;  %v3136_v56 = vpack.c.bf16 %v571_v51, %v568_v50 }
  0xbc   :  { %v103_v61 = vpop.permute.xlu0 %102  ;;  %247 = vmatprep.mubr.f32.mxu0 %v2949_v1  ;;  %2467 = vmatpush1.bf16.msra.mxu0 %v2466_v52  ;;  %v3142_v59 = vpack.c.bf16 %v572_v55, %v569_v54 }
  0xbd   :  { %v109_v62 = vpop.permute.xlu1 %108  ;;  %vm111_vm3 = vcmp.eq.s32.totalorder %v103_v61, %v3070_v45  ;;  %2469 = vmatprep.subr.bf16.mxu0 %v2468_v53  ;;  %v3132_v53 = vpack.c.bf16 %v564_v48, %v561_v47 }
  0xbe   :  { %vm113_vm4 = vcmp.eq.s32.totalorder %v109_v62, %v3070_v45  ;;  %v2097_v3 = vsel %vm111_vm3, 1.0, %v2949_v1  ;;  %v3149_v62 = vpack.c.bf16 %v570_v58, %v567_v57 }
  0xbf   :  { %2101 = vmatmul.mubr.msk.f32.gmra.mrb[2].mxu0 %vm164_vm0, %v2097_v3  ;;  %2263 = vmatmul.mubr.msk.f32.vlgmr.msra.gmra.mrb[0].mxu1 %vm164_vm0, %v2097_v3  ;;  %v2099_v9 = vsel %vm113_vm4, 1.0, %v2949_v1 }
  0xc0   :  { %2479 = vmatpush3.bf16.msra.mxu1 %v2476_v43  ;;  %253 = vmatprep.mubr.f32.mxu0 %v2949_v1  ;;  %v563_v43 = vld [vmem:[#allocation8 + $0x70] sm:$0xff] }
  0xc1   :  { %2471 = vmatpush1.bf16.msra.mxu0 %v2470_v63  ;;  %2481 = vmatprep.subr.bf16.mxu1 %v2480_v0  ;;  %v76_v10 = vpop.permute.xlu0 %75  ;;  %v3128_v52 = vpack.c.bf16 %v566_v44, %v563_v43 }
  0xc2   :  { %v79_v11 = vpop.permute.xlu1 %78  ;;  %2265 = vmatprep.mubr.msk.f32.mxu1 %vm164_vm0, %v2098_v8  ;;  %2473 = vmatprep.subr.bf16.mxu0 %v2472_v4  ;;  %vm86_vm5 = vcmp.eq.s32.totalorder %v76_v10, %v3070_v45 }
  0xc3   :  { %2102 = vmatmul.mubr.msk.f32.gmra.mrb[4].mxu0 %vm164_vm0, %v2098_v8  ;;  %2266 = vmatmul.mubr.msk.f32.gmra.mrb[2].mxu1 %vm164_vm0, %v2099_v9  ;;  %v2092_v14 = vsel %vm86_vm5, 1.0, %v2949_v1  ;;  %vm87_vm6 = vcmp.eq.s32.totalorder %v79_v11, %v3070_v45 }
  0xc4   :  { %2483 = vmatpush3.bf16.msra.mxu1 %v2480_v0  ;;  %259 = vmatprep.mubr.f32.mxu0 %v2949_v1  ;;  %v2093_v29 = vsel %vm87_vm6, 1.0, %v2949_v1 }
  0xc5   :  { %2475 = vmatpush1.bf16.msra.mxu0 %v2474_v12  ;;  %2485 = vmatprep.subr.bf16.mxu1 %v2484_v13  ;;  %v85_v30 = vpop.permute.xlu0 %84 }
  0xc6   :  { %v82_v16 = vpop.permute.xlu1 %81  ;;  %375 = vmatprep.subr.mxu0 %v141_v15  ;;  %2282 = vmatprep.mubr.msk.f32.mxu1 %vm164_vm0, %v2092_v14  ;;  %vm89_vm8 = vcmp.eq.s32.totalorder %v85_v30, %v3070_v45 }
  0xc7   :  { %2103 = vmatmul.mubr.msk.f32.gmra.mrb[6].mxu0 %vm164_vm0, %v2099_v9  ;;  %vm88_vm7 = vcmp.eq.s32.totalorder %v82_v16, %v3070_v45  ;;  %v2095_v49 = vsel %vm89_vm8, 1.0, %v2949_v1 }
  0xc8   :  { %2487 = vmatpush3.bf16.msra.mxu1 %v2484_v13  ;;  %427 = vmatprep.mubr.f32.mxu0 %v2949_v1  ;;  %v2094_v35 = vsel %vm88_vm7, 1.0, %v2949_v1 }
  0xc9   :  { %376 = vmatpush1.msra.mxu0 %v140_v17  ;;  %2280 = vmatprep.subr.mxu1 %v142_v20 }
  0xca   :  { %2504 = vmatprep.subr.bf16.mxu0 %v2952_v31  ;;  %v585_v61 = vpop.permute.xlu1 %584 }
  0xcb   :  { %2108 = vmatmul.mubr.msk.f32.vlgmr.msra.gmra.mrb[0].mxu0 %vm164_vm0, %v2092_v14  ;;  %v3154_v63 = vsel %vm587_vm9, %v580_v60, %v585_v61 }
  0xcc   :  { %2281 = vmatpush3.msra.mxu1 %v142_v20  ;;  %2506 = vmatpush3.bf16.msra.mxu0 %v3097_v25 }
  0xcd   :  { %2283 = vmatmul.mubr.msk.f32.vlgmr.msra.gmra.mrb[0].mxu1 %vm164_vm0, %v2093_v29  ;;  %2489 = vmatprep.subr.bf16.mxu1 %v3099_v26 }
  0xce   :  { %2285 = vmatprep.mubr.msk.f32.mxu1 %vm164_vm0, %v2094_v35  ;;  %2491 = vmatpush1.bf16.msra.mxu1 %v3103_v32 }
  0xcf   :  { %433 = vmatprep.mubr.f32.mxu0 %v2949_v1  ;;  %2507 = vmatprep.subr.bf16.mxu0 %v2952_v31 }
  0xd0   :  { %2109 = vmatmul.mubr.msk.f32.gmra.mrb[2].mxu0 %vm164_vm0, %v2093_v29  ;;  %2493 = vmatprep.subr.bf16.mxu1 %v3108_v38 }
  0xd1   :  { %2286 = vmatmul.mubr.msk.f32.gmra.mrb[2].mxu1 %vm164_vm0, %v2095_v49  ;;  %2509 = vmatpush3.bf16.msra.mxu0 %v3113_v41 }
  0xd2   :  { %2495 = vmatpush1.bf16.msra.mxu1 %v3117_v42  ;;  %439 = vmatprep.mubr.f32.mxu0 %v2949_v1 }
  0xd3   :  { %2510 = vmatprep.subr.bf16.mxu0 %v2952_v31  ;;  %2497 = vmatprep.subr.bf16.mxu1 %v3121_v46 }
  0xd4   :  { %2110 = vmatmul.mubr.msk.f32.gmra.mrb[4].mxu0 %vm164_vm0, %v2094_v35  ;;  %660 = vmatprep.mubr.f32.mxu1 %v2949_v1 }
  0xd5   :  { %2512 = vmatpush3.bf16.msra.mxu0 %v3128_v52  ;;  %445 = vmatprep.mubr.f32.mxu0 %v2949_v1 }
  0xd6   :  { %2499 = vmatpush1.bf16.msra.mxu1 %v3132_v53  ;;  %2513 = vmatprep.subr.bf16.mxu0 %v2952_v31 }
  0xd7   :  { %2501 = vmatprep.subr.bf16.mxu1 %v3136_v56 }
  0xd8   :  { %2111 = vmatmul.mubr.msk.f32.gmra.mrb[6].mxu0 %vm164_vm0, %v2095_v49 }
  0xd9   :  { %2515 = vmatpush3.bf16.msra.mxu0 %v3142_v59  ;;  %2304 = vmatprep.mubr.msk.f32.mxu0 %vm2953_vm10, %v2949_v1 }
  0xda   :  { %2503 = vmatpush1.bf16.msra.mxu1 %v3149_v62  ;;  %2532 = vmatprep.subr.bf16.mxu0 %v2952_v31 }
  0xdb   :  { %2517 = vmatprep.subr.bf16.mxu1 %v3099_v26 }
  0xdc   :  { %2305 = vmatmul.mubr.msk.f32.vlgmr.msra.gmra.mrb[8].mxu0 %vm592_vm11, %v3154_v63 }
  0xdd   :  { %2118 = vmatmul.mubr.msk.f32.vlgmr.msra.gmra.mrb[4].mxu1 %vm592_vm11, %v3154_v63  ;;  %2534 = vmatpush3.bf16.msra.mxu0 %v3097_v25 }
  0xde   :  { %2519 = vmatpush1.bf16.msra.mxu1 %v3103_v32  ;;  %2535 = vmatprep.subr.bf16.mxu0 %v2952_v31 }
  0xdf   :  { %2521 = vmatprep.subr.bf16.mxu1 %v3108_v38  ;;  %828 = vmatprep.mubr.f32.mxu1 %v2949_v1 }
  0xe0   :  { %2323 = vmatprep.mubr.msk.f32.mxu0 %vm2953_vm10, %v2949_v1 }
  0xe1   :  { %2537 = vmatpush3.bf16.msra.mxu0 %v3113_v41 }
  0xe2   :  { %2523 = vmatpush1.bf16.msra.mxu1 %v3117_v42  ;;  %2538 = vmatprep.subr.bf16.mxu0 %v2952_v31 }
  0xe3   :  { %2525 = vmatprep.subr.bf16.mxu1 %v3121_v46 }
  0xe5   :  { %2540 = vmatpush3.bf16.msra.mxu0 %v3128_v52 }
  0xe6   :  { %2527 = vmatpush1.bf16.msra.mxu1 %v3132_v53  ;;  %2541 = vmatprep.subr.bf16.mxu0 %v2952_v31 }
  0xe7   :  { %2529 = vmatprep.subr.bf16.mxu1 %v3136_v56 }
  0xe9   :  { %2543 = vmatpush3.bf16.msra.mxu0 %v3142_v59 }
  0xea   :  { %2531 = vmatpush1.bf16.msra.mxu1 %v3149_v62  ;;  %2560 = vmatprep.subr.bf16.mxu0 %v2952_v31 }
  0xeb   :  { %2545 = vmatprep.subr.bf16.mxu1 %v3099_v26 }
 0x19e   :  { %v429_v0 = vpop.f32.mrb[0].mxu0 }
 0x19f   :  { %537 = vst [vmem:[#allocation2] sm:$0xff] %v429_v0  ;;  %v431_v2 = vpop.f32.mrb[1].mxu0 }
 0x1a0   :  { %538 = vst [vmem:[#allocation2 + $0x8] sm:$0xff] %v431_v2  ;;  %v2284_v3 = vpop.f32.mrb[0].mxu1 }
 0x1a1   :  { %542 = vst [vmem:[#allocation2 + $0x28] sm:$0xff] %v2284_v3  ;;  %v518_v4 = vpop.f32.mrb[1].mxu1 }
 0x1a2   :  { %539 = vst [vmem:[#allocation2 + $0x10] sm:$0xff] %v518_v4 }
 0x1a3   :  { %v435_v5 = vpop.f32.mrb[2].mxu0 }
 0x1a4   :  { %540 = vst [vmem:[#allocation2 + $0x18] sm:$0xff] %v435_v5  ;;  %v437_v6 = vpop.f32.mrb[3].mxu0  ;;  %v2287_v7 = vpop.f32.mrb[2].mxu1 }
 0x1a5   :  { %541 = vst [vmem:[#allocation2 + $0x20] sm:$0xff] %v437_v6  ;;  %548 = vst [vmem:[#allocation2 + $0x58] sm:$0xff] %v2287_v7  ;;  %v528_v8 = vpop.f32.mrb[3].mxu1 }
 0x1a6   :  { %545 = vst [vmem:[#allocation2 + $0x40] sm:$0xff] %v528_v8  ;;  %v589_v14 = vld [vmem:[#allocation2] sm:$0xf]  ;;  %v758_v54 = vld [vmem:[#allocation2] sm:$0xf0] }
 0x1a7   :  { %v441_v9 = vpop.f32.mrb[4].mxu0  ;;  %v590_v20 = vld [vmem:[#allocation2 + $0x8] sm:$0xf]  ;;  %v759_v60 = vld [vmem:[#allocation2 + $0x8] sm:$0xf0] }
 0x1a8   :  { %543 = vst [vmem:[#allocation2 + $0x30] sm:$0xff] %v441_v9  ;;  %v443_v10 = vpop.f32.mrb[5].mxu0 }
 0x1a9   :  { %544 = vst [vmem:[#allocation2 + $0x38] sm:$0xff] %v443_v10  ;;  %v591_v34 = vld [vmem:[#allocation2 + $0x10] sm:$0xf]  ;;  %v760_v7 = vld [vmem:[#allocation2 + $0x10] sm:$0xf0] }
 0x1ab   :  { %v447_v11 = vpop.f32.mrb[6].mxu0 }
 0x1ac   :  { %546 = vst [vmem:[#allocation2 + $0x48] sm:$0xff] %v447_v11  ;;  %v449_v12 = vpop.f32.mrb[7].mxu0 }
 0x1ad   :  { %547 = vst [vmem:[#allocation2 + $0x50] sm:$0xff] %v449_v12 }
 0x1af   :  { %v733_v13 = vpop.f32.mrb[8].mxu0 }
 0x1b0   :  { %v662_v15 = vpop.f32.mrb[4].mxu1  ;;  %v2306_v16 = vpop.f32.mrb[9].mxu0  ;;  %v751_v29 = vadd.f32 %v3187_v27, %v733_v13 }
 0x1b1   :  { %v737_v17 = vadd.f32 %v662_v15, %v589_v14  ;;  %v664_v18 = vpop.f32.mrb[5].mxu1 }
 0x1b2   :  { %v744_v21 = vadd.f32 %v664_v18, %v590_v20 }
 0x1b3   :  { %v2120_v19 = vmul.f32 -1.442695, %v737_v17 }
 0x1b4   :  { %v2121_v22 = vmul.f32 -1.442695, %v744_v21 }
 0x1b5   :  { %2745 = vpow2.f32 %v2120_v19  ;;  %v941_v19 = vld [vmem:[#allocation2 + $0x18] sm:$0xf] }
 0x1b6   :  { %2747 = vpow2.f32 %v2121_v22 }
 0x1bf   :  { %v2746_v23 = vpop.eup %2745 }
 0x1c0   :  { %v741_v24 = vadd.f32 1.0, %v2746_v23  ;;  %v2748_v28 = vpop.eup %2747 }
 0x1c1   :  { %v748_v36 = vadd.f32 1.0, %v2748_v28 }
 0x1c2   :  { %2749 = vrcp.f32 %v741_v24 }
 0x1cc   :  { %v2750_v30 = vpop.eup %2749 }
 0x1cd   :  { %v752_v33 = vmul.f32 %v2750_v30, %v751_v29  ;;  %v942_v29 = vld [vmem:[#allocation2 + $0x20] sm:$0xf] }
 0x1cf   :  { %v753_v35 = vadd.f32 %v752_v33, %v591_v34 }
 0x1d1   :  { %2751 = vtanh.f32 %v753_v35 }
 0x1d2   :  { %2753 = vrcp.f32 %v748_v36 }
 0x1db   :  { %v2752_v37 = vpop.eup %2751 }
 0x1dc   :  { %v755_v39 = vsub.f32 %v3154_v63, %v2752_v37  ;;  %v2754_v40 = vpop.eup %2753 }
 0x1de   :  { %v756_v43 = vmul.f32 %v2754_v40, %v755_v39  ;;  %v943_v40 = vld [vmem:[#allocation2 + $0x28] sm:$0xf] }
 0x1e0   :  { %v3191_v44 = vadd.f32 %v2752_v37, %v756_v43 }
 0x1e2   :  { %2122 = vmatmul.mubr.msk.f32.vlgmr.msra.gmra.mrb[6].mxu1 %vm592_vm11, %v3191_v44  ;;  %2324 = vmatmul.mubr.msk.f32.vlgmr.msra.gmra.mrb[10].mxu0 %vm592_vm11, %v3191_v44 }
 0x1e3   :  { %2547 = vmatpush1.bf16.msra.mxu1 %v3103_v32  ;;  %2562 = vmatpush3.bf16.msra.mxu0 %v3097_v25 }
 0x1e4   :  { %2549 = vmatprep.subr.bf16.mxu1 %v3108_v38  ;;  %2563 = vmatprep.subr.bf16.mxu0 %v2952_v31 }
 0x1e5   :  { %1012 = vmatprep.mubr.f32.mxu1 %v2949_v1  ;;  %2342 = vmatprep.mubr.msk.f32.mxu0 %vm2953_vm10, %v2949_v1 }
 0x1e7   :  { %2551 = vmatpush1.bf16.msra.mxu1 %v3117_v42  ;;  %2565 = vmatpush3.bf16.msra.mxu0 %v3113_v41 }
 0x1e8   :  { %2553 = vmatprep.subr.bf16.mxu1 %v3121_v46  ;;  %2566 = vmatprep.subr.bf16.mxu0 %v2952_v31 }
 0x1eb   :  { %2555 = vmatpush1.bf16.msra.mxu1 %v3132_v53  ;;  %2568 = vmatpush3.bf16.msra.mxu0 %v3128_v52 }
 0x1ec   :  { %2557 = vmatprep.subr.bf16.mxu1 %v3136_v56  ;;  %2569 = vmatprep.subr.bf16.mxu0 %v2952_v31 }
 0x1ef   :  { %2559 = vmatpush1.bf16.msra.mxu1 %v3149_v62  ;;  %2571 = vmatpush3.bf16.msra.mxu0 %v3142_v59 }
 0x1f0   :  { %2573 = vmatprep.subr.bf16.mxu1 %v3099_v26  ;;  %2588 = vmatprep.subr.bf16.mxu0 %v2952_v31 }
 0x2b5   :  { %v830_v47 = vpop.f32.mrb[6].mxu1  ;;  %v901_v48 = vpop.f32.mrb[10].mxu0 }
 0x2b6   :  { %v906_v49 = vrot.slane %v830_v47, 4  ;;  %v832_v50 = vpop.f32.mrb[7].mxu1  ;;  %v2325_v51 = vpop.f32.mrb[11].mxu0  ;;  %v925_v3 = vadd.f32 %v3187_v27, %v901_v48 }
 0x2b7   :  { %v916_v58 = vrot.slane %v832_v50, 4 }
 0x2b8   :  { %v908_v55 = vadd.f32 %v906_v49, %v758_v54  ;;  %v927_v4 = vrot.slane %v925_v3, 4  ;;  %v1116_v3 = vld [vmem:[#allocation2 + $0x18] sm:$0xf0] }
 0x2b9   :  { %v918_v61 = vadd.f32 %v916_v58, %v759_v60 }
 0x2ba   :  { %v2124_v57 = vmul.f32 -1.442695, %v908_v55 }
 0x2bb   :  { %v2125_v2 = vmul.f32 -1.442695, %v918_v61 }
 0x2bc   :  { %2755 = vpow2.f32 %v2124_v57 }
 0x2c6   :  { %v2756_v63 = vpop.eup %2755 }
 0x2c7   :  { %v912_v0 = vadd.f32 1.0, %v2756_v63 }
 0x2c9   :  { %2757 = vrcp.f32 %v912_v0 }
 0x2ca   :  { %2759 = vpow2.f32 %v2125_v2 }
 0x2d3   :  { %v2758_v5 = vpop.eup %2757 }
 0x2d4   :  { %v929_v6 = vmul.f32 %v2758_v5, %v927_v4  ;;  %v2760_v9 = vpop.eup %2759 }
 0x2d5   :  { %v922_v10 = vadd.f32 1.0, %v2760_v9 }
 0x2d6   :  { %v930_v8 = vadd.f32 %v929_v6, %v760_v7  ;;  %v1117_v7 = vld [vmem:[#allocation2 + $0x20] sm:$0xf0] }
 0x2d8   :  { %2761 = vtanh.f32 %v930_v8 }
 0x2d9   :  { %2763 = vrcp.f32 %v922_v10 }
 0x2e2   :  { %v2762_v11 = vpop.eup %2761 }
 0x2e3   :  { %v933_v12 = vrot.slane %v2762_v11, 4  ;;  %v2764_v15 = vpop.eup %2763 }
 0x2e5   :  { %v935_v13 = vsub.f32 %v3191_v44, %v933_v12 }
 0x2e7   :  { %v937_v14 = vrot.slane %v935_v13, 4 }
 0x2e9   :  { %v939_v16 = vmul.f32 %v2764_v15, %v937_v14 }
 0x2eb   :  { %v940_v17 = vadd.f32 %v2762_v11, %v939_v16  ;;  %v1118_v16 = vld [vmem:[#allocation2 + $0x28] sm:$0xf0] }
 0x2ed   :  { %v3218_v18 = vrot.slane %v940_v17, 4 }
 0x2ef   :  { %2126 = vmatmul.mubr.msk.f32.vlgmr.msra.gmra.mrb[8].mxu1 %vm592_vm11, %v3218_v18  ;;  %2343 = vmatmul.mubr.msk.f32.vlgmr.msra.gmra.mrb[12].mxu0 %vm592_vm11, %v3218_v18 }
 0x2f0   :  { %2575 = vmatpush1.bf16.msra.mxu1 %v3103_v32  ;;  %2590 = vmatpush3.bf16.msra.mxu0 %v3097_v25 }
 0x2f1   :  { %2577 = vmatprep.subr.bf16.mxu1 %v3108_v38  ;;  %2591 = vmatprep.subr.bf16.mxu0 %v2952_v31 }
 0x2f2   :  { %1186 = vmatprep.mubr.f32.mxu1 %v2949_v1  ;;  %2361 = vmatprep.mubr.msk.f32.mxu0 %vm2953_vm10, %v2949_v1 }
 0x2f4   :  { %2579 = vmatpush1.bf16.msra.mxu1 %v3117_v42  ;;  %2593 = vmatpush3.bf16.msra.mxu0 %v3113_v41 }
 0x2f5   :  { %2581 = vmatprep.subr.bf16.mxu1 %v3121_v46  ;;  %2594 = vmatprep.subr.bf16.mxu0 %v2952_v31 }
 0x2f8   :  { %2583 = vmatpush1.bf16.msra.mxu1 %v3132_v53  ;;  %2596 = vmatpush3.bf16.msra.mxu0 %v3128_v52 }
 0x2f9   :  { %2585 = vmatprep.subr.bf16.mxu1 %v3136_v56  ;;  %2597 = vmatprep.subr.bf16.mxu0 %v2952_v31 }
 0x2fc   :  { %2587 = vmatpush1.bf16.msra.mxu1 %v3149_v62  ;;  %2599 = vmatpush3.bf16.msra.mxu0 %v3142_v59 }
 0x2fd   :  { %2601 = vmatprep.subr.bf16.mxu1 %v3099_v26  ;;  %2616 = vmatprep.subr.bf16.mxu0 %v2952_v31 }
 0x3c2   :  { %v1014_v20 = vpop.f32.mrb[8].mxu1  ;;  %v1085_v21 = vpop.f32.mrb[12].mxu0 }
 0x3c3   :  { %v1089_v22 = vadd.f32 %v1014_v20, %v941_v19  ;;  %v1016_v23 = vpop.f32.mrb[9].mxu1  ;;  %v2344_v24 = vpop.f32.mrb[13].mxu0  ;;  %v1103_v36 = vadd.f32 %v3187_v27, %v1085_v21 }
 0x3c4   :  { %v1096_v30 = vadd.f32 %v1016_v23, %v942_v29 }
 0x3c5   :  { %v2128_v28 = vmul.f32 -1.442695, %v1089_v22 }
 0x3c6   :  { %v2129_v35 = vmul.f32 -1.442695, %v1096_v30 }
 0x3c7   :  { %2765 = vpow2.f32 %v2128_v28 }
 0x3d1   :  { %v2766_v33 = vpop.eup %2765 }
 0x3d2   :  { %v1093_v34 = vadd.f32 1.0, %v2766_v33 }
 0x3d4   :  { %2767 = vrcp.f32 %v1093_v34  ;;  %v1299_v34 = vld [vmem:[#allocation2 + $0x30] sm:$0xf] }
 0x3d5   :  { %2769 = vpow2.f32 %v2129_v35 }
 0x3de   :  { %v2768_v37 = vpop.eup %2767 }
 0x3df   :  { %v1104_v39 = vmul.f32 %v2768_v37, %v1103_v36  ;;  %v2770_v47 = vpop.eup %2769 }
 0x3e0   :  { %v1100_v48 = vadd.f32 1.0, %v2770_v47  ;;  %v1300_v47 = vld [vmem:[#allocation2 + $0x38] sm:$0xf] }
 0x3e1   :  { %v1105_v43 = vadd.f32 %v1104_v39, %v943_v40 }
 0x3e3   :  { %2771 = vtanh.f32 %v1105_v43 }
 0x3e4   :  { %2773 = vrcp.f32 %v1100_v48 }
 0x3ed   :  { %v2772_v49 = vpop.eup %2771 }
 0x3ee   :  { %v1108_v50 = vrot.slane %v2772_v49, 4  ;;  %v2774_v55 = vpop.eup %2773 }
 0x3f0   :  { %v1110_v51 = vsub.f32 %v940_v17, %v1108_v50 }
 0x3f2   :  { %v1112_v54 = vrot.slane %v1110_v51, 4 }
 0x3f4   :  { %v1114_v57 = vmul.f32 %v2774_v55, %v1112_v54 }
 0x3f6   :  { %v3244_v58 = vadd.f32 %v2772_v49, %v1114_v57 }
 0x3f8   :  { %2130 = vmatmul.mubr.msk.f32.vlgmr.msra.gmra.mrb[10].mxu1 %vm592_vm11, %v3244_v58  ;;  %2362 = vmatmul.mubr.msk.f32.vlgmr.msra.gmra.mrb[14].mxu0 %vm592_vm11, %v3244_v58 }
 0x3f9   :  { %2603 = vmatpush1.bf16.msra.mxu1 %v3103_v32  ;;  %2618 = vmatpush3.bf16.msra.mxu0 %v3097_v25 }
 0x3fa   :  { %2605 = vmatprep.subr.bf16.mxu1 %v3108_v38  ;;  %2619 = vmatprep.subr.bf16.mxu0 %v2952_v31 }
 0x3fb   :  { %1370 = vmatprep.mubr.f32.mxu1 %v2949_v1  ;;  %2380 = vmatprep.mubr.msk.f32.mxu0 %vm2953_vm10, %v2949_v1 }
 0x3fd   :  { %2607 = vmatpush1.bf16.msra.mxu1 %v3117_v42  ;;  %2621 = vmatpush3.bf16.msra.mxu0 %v3113_v41 }
 0x3fe   :  { %2609 = vmatprep.subr.bf16.mxu1 %v3121_v46  ;;  %2622 = vmatprep.subr.bf16.mxu0 %v2952_v31 }
 0x401   :  { %2611 = vmatpush1.bf16.msra.mxu1 %v3132_v53  ;;  %2624 = vmatpush3.bf16.msra.mxu0 %v3128_v52 }
 0x402   :  { %2613 = vmatprep.subr.bf16.mxu1 %v3136_v56  ;;  %2625 = vmatprep.subr.bf16.mxu0 %v2952_v31 }
 0x405   :  { %2615 = vmatpush1.bf16.msra.mxu1 %v3149_v62  ;;  %2627 = vmatpush3.bf16.msra.mxu0 %v3142_v59 }
 0x406   :  { %2629 = vmatprep.subr.bf16.mxu1 %v3099_v26  ;;  %2644 = vmatprep.subr.bf16.mxu0 %v2952_v31 }
 0x4cb   :  { %v1188_v60 = vpop.f32.mrb[10].mxu1  ;;  %v1259_v61 = vpop.f32.mrb[14].mxu0 }
 0x4cc   :  { %v1264_v63 = vrot.slane %v1188_v60, 4  ;;  %v1190_v0 = vpop.f32.mrb[11].mxu1  ;;  %v2363_v2 = vpop.f32.mrb[15].mxu0  ;;  %v1283_v12 = vadd.f32 %v3187_v27, %v1259_v61  ;;  %v1301_v60 = vld [vmem:[#allocation2 + $0x40] sm:$0xf] }
 0x4cd   :  { %v1274_v6 = vrot.slane %v1190_v0, 4 }
 0x4ce   :  { %v1266_v4 = vadd.f32 %v1264_v63, %v1116_v3  ;;  %v1285_v13 = vrot.slane %v1283_v12, 4 }
 0x4cf   :  { %v1276_v8 = vadd.f32 %v1274_v6, %v1117_v7 }
 0x4d0   :  { %v2132_v5 = vmul.f32 -1.442695, %v1266_v4 }
 0x4d1   :  { %v2133_v11 = vmul.f32 -1.442695, %v1276_v8 }
 0x4d2   :  { %2775 = vpow2.f32 %v2132_v5 }
 0x4dc   :  { %v2776_v9 = vpop.eup %2775 }
 0x4dd   :  { %v1270_v10 = vadd.f32 1.0, %v2776_v9 }
 0x4df   :  { %2777 = vrcp.f32 %v1270_v10 }
 0x4e0   :  { %2779 = vpow2.f32 %v2133_v11 }
 0x4e9   :  { %v2778_v14 = vpop.eup %2777 }
 0x4ea   :  { %v1287_v15 = vmul.f32 %v2778_v14, %v1285_v13  ;;  %v2780_v19 = vpop.eup %2779 }
 0x4eb   :  { %v1280_v20 = vadd.f32 1.0, %v2780_v19 }
 0x4ec   :  { %v1288_v17 = vadd.f32 %v1287_v15, %v1118_v16  ;;  %v1474_v16 = vld [vmem:[#allocation2 + $0x30] sm:$0xf0] }
 0x4ee   :  { %2781 = vtanh.f32 %v1288_v17 }
 0x4ef   :  { %2783 = vrcp.f32 %v1280_v20 }
 0x4f8   :  { %v2782_v21 = vpop.eup %2781 }
 0x4f9   :  { %v1291_v22 = vrot.slane %v2782_v21, 4  ;;  %v2784_v28 = vpop.eup %2783 }
 0x4fb   :  { %v1293_v23 = vsub.f32 %v3244_v58, %v1291_v22 }
 0x4fd   :  { %v1295_v24 = vrot.slane %v1293_v23, 4 }
 0x4ff   :  { %v1297_v29 = vmul.f32 %v2784_v28, %v1295_v24 }
 0x501   :  { %v1298_v30 = vadd.f32 %v2782_v21, %v1297_v29  ;;  %v1475_v21 = vld [vmem:[#allocation2 + $0x38] sm:$0xf0] }
 0x503   :  { %v1303_v33 = vrot.slane %v1298_v30, 4 }
 0x505   :  { %2134 = vmatmul.mubr.msk.f32.vlgmr.msra.gmra.mrb[12].mxu1 %vm592_vm11, %v1303_v33  ;;  %2381 = vmatmul.mubr.msk.f32.vlgmr.msra.gmra.mrb[16].mxu0 %vm592_vm11, %v1303_v33 }
 0x506   :  { %2631 = vmatpush1.bf16.msra.mxu1 %v3103_v32  ;;  %2646 = vmatpush3.bf16.msra.mxu0 %v3097_v25 }
 0x507   :  { %2633 = vmatprep.subr.bf16.mxu1 %v3108_v38  ;;  %2647 = vmatprep.subr.bf16.mxu0 %v2952_v31 }
 0x508   :  { %1544 = vmatprep.mubr.f32.mxu1 %v2949_v1  ;;  %2399 = vmatprep.mubr.msk.f32.mxu0 %vm2953_vm10, %v2949_v1 }
 0x50a   :  { %2635 = vmatpush1.bf16.msra.mxu1 %v3117_v42  ;;  %2649 = vmatpush3.bf16.msra.mxu0 %v3113_v41 }
 0x50b   :  { %2637 = vmatprep.subr.bf16.mxu1 %v3121_v46  ;;  %2650 = vmatprep.subr.bf16.mxu0 %v2952_v31 }
 0x50e   :  { %2639 = vmatpush1.bf16.msra.mxu1 %v3132_v53  ;;  %2652 = vmatpush3.bf16.msra.mxu0 %v3128_v52 }
 0x50f   :  { %2641 = vmatprep.subr.bf16.mxu1 %v3136_v56  ;;  %2653 = vmatprep.subr.bf16.mxu0 %v2952_v31 }
 0x512   :  { %2643 = vmatpush1.bf16.msra.mxu1 %v3149_v62  ;;  %2655 = vmatpush3.bf16.msra.mxu0 %v3142_v59 }
 0x513   :  { %2657 = vmatprep.subr.bf16.mxu1 %v3099_v26  ;;  %2672 = vmatprep.subr.bf16.mxu0 %v2952_v31 }
 0x5d8   :  { %v1372_v35 = vpop.f32.mrb[12].mxu1  ;;  %v1443_v36 = vpop.f32.mrb[16].mxu0 }
 0x5d9   :  { %v1447_v37 = vadd.f32 %v1372_v35, %v1299_v34  ;;  %v1374_v39 = vpop.f32.mrb[13].mxu1  ;;  %v2382_v40 = vpop.f32.mrb[17].mxu0  ;;  %v1461_v54 = vadd.f32 %v3187_v27, %v1443_v36  ;;  %v1476_v34 = vld [vmem:[#allocation2 + $0x40] sm:$0xf0] }
 0x5da   :  { %v1454_v48 = vadd.f32 %v1374_v39, %v1300_v47 }
 0x5db   :  { %v2136_v43 = vmul.f32 -1.442695, %v1447_v37 }
 0x5dc   :  { %v2137_v51 = vmul.f32 -1.442695, %v1454_v48 }
 0x5dd   :  { %2785 = vpow2.f32 %v2136_v43 }
 0x5e7   :  { %v2786_v49 = vpop.eup %2785 }
 0x5e8   :  { %v1451_v50 = vadd.f32 1.0, %v2786_v49 }
 0x5ea   :  { %2787 = vrcp.f32 %v1451_v50 }
 0x5eb   :  { %2789 = vpow2.f32 %v2137_v51 }
 0x5f4   :  { %v2788_v55 = vpop.eup %2787 }
 0x5f5   :  { %v1462_v57 = vmul.f32 %v2788_v55, %v1461_v54  ;;  %v2790_v63 = vpop.eup %2789 }
 0x5f6   :  { %v1458_v0 = vadd.f32 1.0, %v2790_v63 }
 0x5f7   :  { %v1463_v61 = vadd.f32 %v1462_v57, %v1301_v60 }
 0x5f9   :  { %2791 = vtanh.f32 %v1463_v61 }
 0x5fa   :  { %2793 = vrcp.f32 %v1458_v0 }
 0x603   :  { %v2792_v2 = vpop.eup %2791 }
 0x604   :  { %v1466_v3 = vrot.slane %v2792_v2, 4  ;;  %v2794_v6 = vpop.eup %2793 }
 0x606   :  { %v1468_v4 = vsub.f32 %v1298_v30, %v1466_v3 }
 0x608   :  { %v1470_v5 = vrot.slane %v1468_v4, 4 }
 0x60a   :  { %v1472_v7 = vmul.f32 %v2794_v6, %v1470_v5 }
 0x60c   :  { %v1473_v8 = vadd.f32 %v2792_v2, %v1472_v7 }
 0x60e   :  { %2138 = vmatmul.mubr.msk.f32.vlgmr.msra.gmra.mrb[14].mxu1 %vm592_vm11, %v1473_v8  ;;  %v2037_v9 = vsel %vm2025_vm12, %v1303_v33, %v1473_v8  ;;  %v2038_v10 = vsel %vm2025_vm12, %v1473_v8, %v1303_v33  ;;  %2400 = vmatmul.mubr.msk.f32.vlgmr.msra.gmra.mrb[18].mxu0 %vm592_vm11, %v1473_v8 }
 0x60f   :  { %2046 = vst.msk [vmem:[#allocation9 + $0xc] sm:$0xf] %vm2042_vm13, %v2037_v9  ;;  %2047 = vst.msk [vmem:[#allocation9 + $0x10] sm:$0xf] %vm2042_vm13, %v2038_v10  ;;  %2659 = vmatpush1.bf16.msra.mxu1 %v3103_v32  ;;  %2674 = vmatpush3.bf16.msra.mxu0 %v3097_v25 }
 0x610   :  { %2661 = vmatprep.subr.bf16.mxu1 %v3108_v38  ;;  %2675 = vmatprep.subr.bf16.mxu0 %v2952_v31 }
 0x611   :  { %1728 = vmatprep.mubr.f32.mxu1 %v2949_v1  ;;  %2418 = vmatprep.mubr.msk.f32.mxu0 %vm2953_vm10, %v2949_v1 }
 0x613   :  { %2663 = vmatpush1.bf16.msra.mxu1 %v3117_v42  ;;  %2677 = vmatpush3.bf16.msra.mxu0 %v3113_v41 }
 0x614   :  { %2665 = vmatprep.subr.bf16.mxu1 %v3121_v46  ;;  %2678 = vmatprep.subr.bf16.mxu0 %v2952_v31 }
 0x617   :  { %2667 = vmatpush1.bf16.msra.mxu1 %v3132_v53  ;;  %2680 = vmatpush3.bf16.msra.mxu0 %v3128_v52 }
 0x618   :  { %2669 = vmatprep.subr.bf16.mxu1 %v3136_v56  ;;  %2681 = vmatprep.subr.bf16.mxu0 %v2952_v31 }
 0x61b   :  { %2671 = vmatpush1.bf16.msra.mxu1 %v3149_v62  ;;  %2683 = vmatpush3.bf16.msra.mxu0 %v3142_v59 }
 0x61c   :  { %2685 = vmatprep.subr.bf16.mxu1 %v3099_v26  ;;  %2700 = vmatprep.subr.bf16.mxu0 %v2952_v31 }
 0x6e1   :  { %v1546_v11 = vpop.f32.mrb[14].mxu1  ;;  %v1617_v12 = vpop.f32.mrb[18].mxu0 }
 0x6e2   :  { %v1622_v13 = vrot.slane %v1546_v11, 4  ;;  %v1548_v14 = vpop.f32.mrb[15].mxu1  ;;  %v2401_v15 = vpop.f32.mrb[19].mxu0  ;;  %v1641_v26 = vadd.f32 %v3187_v27, %v1617_v12 }
 0x6e3   :  { %v1632_v20 = vrot.slane %v1548_v14, 4 }
 0x6e4   :  { %v1624_v17 = vadd.f32 %v1622_v13, %v1474_v16  ;;  %v1643_v29 = vrot.slane %v1641_v26, 4  ;;  %v1832_v16 = vld [vmem:[#allocation2 + $0x48] sm:$0xf0] }
 0x6e5   :  { %v1634_v22 = vadd.f32 %v1632_v20, %v1475_v21  ;;  %v1833_v21 = vld [vmem:[#allocation2 + $0x50] sm:$0xf0] }
 0x6e6   :  { %v2140_v19 = vmul.f32 -1.442695, %v1624_v17 }
 0x6e7   :  { %v2141_v28 = vmul.f32 -1.442695, %v1634_v22 }
 0x6e8   :  { %2795 = vpow2.f32 %v2140_v19 }
 0x6f2   :  { %v2796_v23 = vpop.eup %2795 }
 0x6f3   :  { %v1628_v24 = vadd.f32 1.0, %v2796_v23 }
 0x6f5   :  { %2797 = vrcp.f32 %v1628_v24 }
 0x6f6   :  { %2799 = vpow2.f32 %v2141_v28 }
 0x6ff   :  { %v2798_v30 = vpop.eup %2797 }
 0x700   :  { %v1645_v33 = vmul.f32 %v2798_v30, %v1643_v29  ;;  %v2800_v36 = vpop.eup %2799 }
 0x701   :  { %v1638_v37 = vadd.f32 1.0, %v2800_v36 }
 0x702   :  { %v1646_v35 = vadd.f32 %v1645_v33, %v1476_v34  ;;  %v1834_v33 = vld [vmem:[#allocation2 + $0x58] sm:$0xf0] }
 0x704   :  { %2801 = vtanh.f32 %v1646_v35 }
 0x705   :  { %2803 = vrcp.f32 %v1638_v37 }
 0x70e   :  { %v2802_v39 = vpop.eup %2801 }
 0x70f   :  { %v1649_v40 = vrot.slane %v2802_v39, 4  ;;  %v2804_v48 = vpop.eup %2803 }
 0x711   :  { %v1651_v43 = vsub.f32 %v1473_v8, %v1649_v40 }
 0x713   :  { %v1653_v47 = vrot.slane %v1651_v43, 4 }
 0x715   :  { %v1655_v49 = vmul.f32 %v2804_v48, %v1653_v47 }
 0x717   :  { %v1656_v50 = vadd.f32 %v2802_v39, %v1655_v49 }
 0x719   :  { %v1661_v51 = vrot.slane %v1656_v50, 4 }
 0x71b   :  { %2142 = vmatmul.mubr.msk.f32.vlgmr.msra.gmra.mrb[16].mxu1 %vm592_vm11, %v1661_v51  ;;  %v2036_v54 = vsel %vm2025_vm12, %v3244_v58, %v1661_v51  ;;  %v2039_v55 = vsel %vm2025_vm12, %v1661_v51, %v3244_v58  ;;  %2419 = vmatmul.mubr.msk.f32.vlgmr.msra.gmra.mrb[20].mxu0 %vm592_vm11, %v1661_v51  ;;  %v1658_v58 = vld [vmem:[#allocation2 + $0x50] sm:$0xf] }
 0x71c   :  { %2045 = vst.msk [vmem:[#allocation9 + $0x8] sm:$0xf] %vm2042_vm13, %v2036_v54  ;;  %2048 = vst.msk [vmem:[#allocation9 + $0x14] sm:$0xf] %vm2042_vm13, %v2039_v55  ;;  %2687 = vmatpush1.bf16.msra.mxu1 %v3103_v32  ;;  %2702 = vmatpush3.bf16.msra.mxu0 %v3097_v25 }
 0x71d   :  { %2689 = vmatprep.subr.bf16.mxu1 %v3108_v38  ;;  %2703 = vmatprep.subr.bf16.mxu0 %v2952_v31 }
 0x71e   :  { %1902 = vmatprep.mubr.f32.mxu1 %v2949_v1  ;;  %2437 = vmatprep.mubr.msk.f32.mxu0 %vm2953_vm10, %v2949_v1  ;;  %v1657_v1 = vld [vmem:[#allocation2 + $0x48] sm:$0xf] }
 0x720   :  { %2691 = vmatpush1.bf16.msra.mxu1 %v3117_v42  ;;  %2705 = vmatpush3.bf16.msra.mxu0 %v3113_v41 }
 0x721   :  { %2693 = vmatprep.subr.bf16.mxu1 %v3121_v46  ;;  %2706 = vmatprep.subr.bf16.mxu0 %v2952_v31 }
 0x724   :  { %2695 = vmatpush1.bf16.msra.mxu1 %v3132_v53  ;;  %2708 = vmatpush3.bf16.msra.mxu0 %v3128_v52 }
 0x725   :  { %2697 = vmatprep.subr.bf16.mxu1 %v3136_v56  ;;  %2709 = vmatprep.subr.bf16.mxu0 %v2952_v31 }
 0x728   :  { %2699 = vmatpush1.bf16.msra.mxu1 %v3149_v62  ;;  %2711 = vmatpush3.bf16.msra.mxu0 %v3142_v59  ;;  %v1659_v59 = vld [vmem:[#allocation2 + $0x58] sm:$0xf] }
 0x7ee   :  { %v1730_v25 = vpop.f32.mrb[16].mxu1  ;;  %v1801_v32 = vpop.f32.mrb[20].mxu0 }
 0x7ef   :  { %v1805_v38 = vadd.f32 %v1730_v25, %v1657_v1  ;;  %v1732_v41 = vpop.f32.mrb[17].mxu1  ;;  %v2420_v42 = vpop.f32.mrb[21].mxu0  ;;  %v1819_v31 = vadd.f32 %v3187_v27, %v1801_v32 }
 0x7f0   :  { %v1812_v53 = vadd.f32 %v1732_v41, %v1658_v58 }
 0x7f1   :  { %v2144_v46 = vmul.f32 -1.442695, %v1805_v38 }
 0x7f2   :  { %v2145_v56 = vmul.f32 -1.442695, %v1812_v53 }
 0x7f3   :  { %2805 = vpow2.f32 %v2144_v46 }
 0x7fd   :  { %v2806_v57 = vpop.eup %2805 }
 0x7fe   :  { %v1809_v52 = vadd.f32 1.0, %v2806_v57 }
 0x800   :  { %2807 = vrcp.f32 %v1809_v52 }
 0x801   :  { %2809 = vpow2.f32 %v2145_v56 }
 0x80a   :  { %v2808_v62 = vpop.eup %2807 }
 0x80b   :  { %v1820_v60 = vmul.f32 %v2808_v62, %v1819_v31  ;;  %v2810_v63 = vpop.eup %2809 }
 0x80c   :  { %v1816_v0 = vadd.f32 1.0, %v2810_v63 }
 0x80d   :  { %v1821_v61 = vadd.f32 %v1820_v60, %v1659_v59 }
 0x80f   :  { %2811 = vtanh.f32 %v1821_v61 }
 0x810   :  { %2813 = vrcp.f32 %v1816_v0 }
 0x819   :  { %v2812_v2 = vpop.eup %2811 }
 0x81a   :  { %v1824_v3 = vrot.slane %v2812_v2, 4  ;;  %v2814_v6 = vpop.eup %2813 }
 0x81c   :  { %v1826_v4 = vsub.f32 %v1656_v50, %v1824_v3 }
 0x81e   :  { %v1828_v5 = vrot.slane %v1826_v4, 4 }
 0x820   :  { %v1830_v7 = vmul.f32 %v2814_v6, %v1828_v5 }
 0x822   :  { %v1831_v8 = vadd.f32 %v2812_v2, %v1830_v7 }
 0x824   :  { %2146 = vmatmul.mubr.msk.f32.vlgmr.msra.gmra.mrb[18].mxu1 %vm592_vm11, %v1831_v8  ;;  %v2035_v9 = vsel %vm2025_vm12, %v3218_v18, %v1831_v8  ;;  %v2040_v10 = vsel %vm2025_vm12, %v1831_v8, %v3218_v18  ;;  %2438 = vmatmul.mubr.msk.f32.vlgmr.msra.gmra.mrb[22].mxu0 %vm592_vm11, %v1831_v8 }
 0x825   :  { %2044 = vst.msk [vmem:[#allocation9 + $0x4] sm:$0xf] %vm2042_vm13, %v2035_v9  ;;  %2049 = vst.msk [vmem:[#allocation9 + $0x18] sm:$0xf] %vm2042_vm13, %v2040_v10 }
 0x8f7   :  { %v1904_v11 = vpop.f32.mrb[18].mxu1  ;;  %v1975_v12 = vpop.f32.mrb[22].mxu0 }
 0x8f8   :  { %v1980_v13 = vrot.slane %v1904_v11, 4  ;;  %v1906_v14 = vpop.f32.mrb[19].mxu1  ;;  %v2439_v15 = vpop.f32.mrb[23].mxu0  ;;  %v1999_v28 = vadd.f32 %v3187_v27, %v1975_v12 }
 0x8f9   :  { %v1990_v20 = vrot.slane %v1906_v14, 4 }
 0x8fa   :  { %v1982_v17 = vadd.f32 %v1980_v13, %v1832_v16  ;;  %v2001_v26 = vrot.slane %v1999_v28, 4 }
 0x8fb   :  { %v1992_v22 = vadd.f32 %v1990_v20, %v1833_v21 }
 0x8fc   :  { %v2148_v19 = vmul.f32 -1.442695, %v1982_v17 }
 0x8fd   :  { %v2149_v24 = vmul.f32 -1.442695, %v1992_v22 }
 0x8fe   :  { %2815 = vpow2.f32 %v2148_v19 }
 0x908   :  { %v2816_v23 = vpop.eup %2815 }
 0x909   :  { %v1986_v18 = vadd.f32 1.0, %v2816_v23 }
 0x90b   :  { %2817 = vrcp.f32 %v1986_v18 }
 0x90c   :  { %2819 = vpow2.f32 %v2149_v24 }
 0x915   :  { %v2818_v29 = vpop.eup %2817 }
 0x916   :  { %v2003_v30 = vmul.f32 %v2818_v29, %v2001_v26  ;;  %v2820_v35 = vpop.eup %2819 }
 0x917   :  { %v1996_v36 = vadd.f32 1.0, %v2820_v35 }
 0x918   :  { %v2004_v34 = vadd.f32 %v2003_v30, %v1834_v33 }
 0x91a   :  { %2821 = vtanh.f32 %v2004_v34 }
 0x91b   :  { %2823 = vrcp.f32 %v1996_v36 }
 0x924   :  { %v2822_v37 = vpop.eup %2821 }
 0x925   :  { %v2007_v39 = vrot.slane %v2822_v37, 4  ;;  %v2824_v47 = vpop.eup %2823 }
 0x927   :  { %v2009_v40 = vsub.f32 %v1831_v8, %v2007_v39 }
 0x929   :  { %v2011_v43 = vrot.slane %v2009_v40, 4 }
 0x92b   :  { %v2013_v48 = vmul.f32 %v2824_v47, %v2011_v43 }
 0x92d   :  { %v2014_v49 = vadd.f32 %v2822_v37, %v2013_v48 }
 0x92f   :  { %2053 = vrot.lane.b32.xlu0 %v2014_v49, %s2955_s26  ;;  %v2019_v27 = vrot.slane %v2014_v49, 4  ;;  %2052 = vst.msk [vmem:[#allocation10 - $0x4] sm:$0xf0] %vm2051_vm14, %v2014_v49 }
 0x931   :  { %v2034_v50 = vsel %vm2025_vm12, %v3191_v44, %v2019_v27  ;;  %v2041_v51 = vsel %vm2025_vm12, %v2019_v27, %v3191_v44 }
 0x932   :  { %2043 = vst.msk [vmem:[#allocation9] sm:$0xf] %vm2042_vm13, %v2034_v50  ;;  %2050 = vst.msk [vmem:[#allocation9 + $0x1c] sm:$0xf] %vm2042_vm13, %v2041_v51 }
 0x933   :  { %2902 = shalt.err (!%p2899_p0)
}
 0x934   :  { %s2903_s8 = scalar_lea.hbm %s3401_s6, 512 }
 0x935   :  { %p2904_p1 = scmp.ne.s32.totalorder %s3401_s6, %s2903_s8  ;;  %p2907_p2 = scmp.lt.u32.totalorder %s2903_s8, %s3401_s6 }
 0x937   :  { %p2909_p3 = pnand %p2907_p2, %p2904_p1 }
 0x939   :  { %2912 = shalt.err (!%p2909_p3)
}
 0x93a   :  { %s2956_s15 = smov 64   ;;  %s2957_s2 = smov 4  }
 0x93b   :  { %2069 = dma.vmem_to_hbm [thread:$0]  %s2064_s25, 512, %s3401_s6, [#allocation5], %s2956_s15, %s2956_s15, %s2957_s2  }
 0x93c   :  { %s2958_s17 = smov [#allocation10]  }
 0x93d   :  { %s2075_s18 = sshll.u32 %s2958_s17, 4  ;;  %s2076_s18 = int_to_ptr.vmem [resolvable:$true] %s2075_s18 }
 0x93e   :  { %s2913_s19 = scalar_lea.vmem %s2076_s18, 128  ;;  %p2918_p5 = scmp.lt.s32.totalorder %s2076_s18, %s2076_s18 }
 0x93f   :  { %p2914_p4 = scmp.ne.s32.totalorder %s2076_s18, %s2913_s19  ;;  %p2919_p6 = scmp.lt.s32.totalorder %s2913_s19, %s2913_s19 }
 0x941   :  { %p2920_p7 = por %p2919_p6, %p2918_p5 }
 0x943   :  { %p2921_p8 = pnand %p2920_p7, %p2914_p4 }
 0x9a1   :  { %v2054_v45 = vpop.permute.xlu0 %2053 }
 0x9a2   :  { %2057 = vst.msk [vmem:[#allocation10] sm:$0xf0] %vm2051_vm14, %v2054_v45 }
 0x9a3   :  { %2924 = shalt.err (!%p2921_p8)
}
 0x9a4   :  { %s2925_s14 = scalar_lea.hbm %s3402_s7, 128 }
 0x9a5   :  { %p2926_p9 = scmp.ne.s32.totalorder %s3402_s7, %s2925_s14  ;;  %p2929_p10 = scmp.lt.u32.totalorder %s2925_s14, %s3402_s7 }
 0x9a7   :  { %p2931_p11 = pnand %p2929_p10, %p2926_p9 }
 0x9a9   :  { %2934 = shalt.err (!%p2931_p11)
}
 0x9aa   :  { %2081 = dma.vmem_to_hbm [thread:$0]  %s2076_s18, 128, %s3402_s7, [#allocation11], %s2956_s15, %s2956_s15, %s2957_s2  }
 0x9ab   :  { %2939 = dma.done.wait [#allocation5], 512  }
 0x9ac   :  { %2940 = vsyncadd [#allocation5], 4294966784 }
 0x9ad   :  { %2941 = dma.done.wait [#allocation11], 128  }
 0x9ae   :  { %2942 = vsyncadd [#allocation11], 4294967168 }
 0x9af   :  { %2088 = vsyncpa [#allocation4], 1 }
 0x9b0   :  { %2089 = vsyncpa [#allocation7], 1 }
 0x9b1   :  { %2090 = vsyncpa [#allocation5], 1 }
 0x9b2   :  { %2091 = vsyncpa [#allocation11], 1 }

</bundles_post_ra>
